<compile_context>
chip_gen: v6e
topology: v6e:2x2x1
jax: 0.10.0
libtpu: 0.0.40
codegen_flags: <defaults>
</compile_context>

<pallas_src>
import functools

import jax
import jax.numpy as jnp
from jax import lax
from jax.experimental import pallas as pl
from jax.experimental.pallas import tpu as pltpu


# -----------------------------------------------------------------------------
# Fused RNNModule kernel on one tile: x tile (S, BLK, N)  ->  out tile (BLK, S, N)
# -----------------------------------------------------------------------------
def make_rnn_module_kernel(S, BLK, N, H, G, eps=1e-5):
    H2, H8 = 2 * H, 8 * H

    def kernel(x_ref, gng_ref, gnb_ref, wih_ref, whh_ref, bg_ref,
               wfc_ref, bfc_ref, out_ref, xp_sc, ha_sc, hb_sc):
        x = x_ref[0]                                     # (S, BLK, N), time-major

        # ---- GroupNorm: per (q) sample over (channels-in-group, S), biased var.
        cpg = N // G
        inv_cnt = 1.0 / float(S * cpg)
        pieces = []
        for g in range(G):                               # static Python loop, G small
            xg = x[:, :, g * cpg:(g + 1) * cpg]
            mu = jnp.sum(xg, axis=(0, 2), keepdims=True) * inv_cnt
            d = xg - mu
            var = jnp.sum(d * d, axis=(0, 2), keepdims=True) * inv_cnt
            pieces.append(d * lax.rsqrt(var + eps))
        xn = pieces[0] if G == 1 else jnp.concatenate(pieces, axis=-1)
        xn = xn * gng_ref[...].reshape(1, 1, N) + gnb_ref[...].reshape(1, 1, N)

        # ---- BiLSTM: one fused input projection for BOTH directions ----------
        # Gate/lane layout (width 8H): [i_f|i_r | f_f|f_r | g_f|g_r | o_f|o_r]
        xp = jnp.dot(xn.reshape(S * BLK, N), wih_ref[...],
                     preferred_element_type=jnp.float32) + bg_ref[...]
        xp_sc[...] = xp.reshape(S, BLK, H8)

        whh = whh_ref[...]                               # (2H, 8H), block-diagonal
        lane = lax.broadcasted_iota(jnp.int32, (BLK, H8), 1)
        fwd_cols = (lane % H2) < H                       # forward-direction columns
        zero = jnp.zeros((BLK, H2), jnp.float32)

        # ---- single recurrence loop: step s handles fwd@t=s and bwd@t=S-1-s --
        # (the xp_sc loads + select don't depend on (h, c), so they are off the
        #  serial critical path and get hidden behind the recurrent matmul)
        def step(s, carry):
            h, c = carry                                 # h = [h_fwd | h_bwd]  (BLK, 2H)
            gin = jnp.where(fwd_cols, xp_sc[s], xp_sc[S - 1 - s])
            gates = gin + jnp.dot(h, whh, preferred_element_type=jnp.float32)
            ig = jax.nn.sigmoid(gates[:, 0 * H2:1 * H2])
            fg = jax.nn.sigmoid(gates[:, 1 * H2:2 * H2])
            gg = jnp.tanh(gates[:, 2 * H2:3 * H2])
            og = jax.nn.sigmoid(gates[:, 3 * H2:4 * H2])
            c = fg * c + ig * gg
            h = og * jnp.tanh(c)
            ha_sc[s] = h                                 # fwd half valid at time s
            hb_sc[S - 1 - s] = h                         # bwd half valid at time S-1-s
            return (h, c)

        lax.fori_loop(0, S, step, (zero, zero),
                      unroll=True if S <= 32 else 4)

        # ---- assemble [h_fwd(t) | h_bwd(t)], fused FC + residual --------------
        half = lax.broadcasted_iota(jnp.int32, (S, BLK, H2), 2) < H
        hcat = jnp.where(half, ha_sc[...], hb_sc[...])            # (S, BLK, 2H)
        y = jnp.dot(hcat.reshape(S * BLK, H2), wfc_ref[...],
                    preferred_element_type=jnp.float32) + bfc_ref[...]
        y = y.reshape(S, BLK, N) + x
        # Output layout [Q, S, N]: absorbs PyTorch's permute(0,2,1,3), so no HBM
        # permute pass is needed between modules (one small VMEM transpose here).
        out_ref[0] = jnp.transpose(y, (1, 0, 2))

    return kernel


# -----------------------------------------------------------------------------
# Tile-size / VMEM budgeting helpers
# -----------------------------------------------------------------------------
def _padded_f32_bytes(*shape):
    s = list(shape)
    s[-1] = -(-s[-1] // 128) * 128
    if len(s) >= 2:
        s[-2] = -(-s[-2] // 8) * 8
    n = 1
    for d in s:
        n *= d
    return 4 * n


def _choose_block_q(Q, S, N, H, budget_bytes=20 * 1024 * 1024):
    """Largest Q-tile (multiple of 8, dividing Q) whose working set fits budget."""
    def tile_bytes(blk):
        return (2 * _padded_f32_bytes(S, blk, N)        # input block, double buffered
                + 2 * _padded_f32_bytes(blk, S, N)      # output block, double buffered
                + _padded_f32_bytes(S, blk, 8 * H)      # fused gate projections
                + 2 * _padded_f32_bytes(S, blk, 2 * H)) # hidden-state buffers
    if Q % 8 != 0:
        return Q                                        # full-dim block (always legal)
    best = None
    for blk in range(8, Q + 1, 8):
        if Q % blk == 0 and tile_bytes(blk) <= budget_bytes:
            best = blk
    return best if best is not None else 8


def _const_index_map(ndim):
    def imap(bi, qi):
        return (0,) * ndim
    return imap


# -----------------------------------------------------------------------------
# One RNNModule forward: [B, S, Q, N] -> [B, Q, S, N]
# -----------------------------------------------------------------------------
def rnn_module_apply(x, params, H, G):
    B, S, Q, N = x.shape
    blk = _choose_block_q(Q, S, N, H)
    grid = (B, Q // blk)

    kernel = make_rnn_module_kernel(S, blk, N, H, G)

    weights = (params['gn_gamma'], params['gn_beta'], params['w_ih'],
               params['w_hh'], params['b_g'], params['w_fc'], params['b_fc'])

    flops = int(2 * B * Q * S * N * 8 * H          # input projection
                + 2 * B * Q * S * 2 * H * 8 * H    # recurrence
                + 2 * B * Q * S * 2 * H * N        # fc
                + 6 * B * Q * S * N)               # norm / residual (approx)
    transc = int(5 * B * Q * S * 2 * H + B * Q * G)
    bytes_acc = int(4 * (2 * B * S * Q * N) + 4 * sum(int(w.size) for w in weights))

    out = pl.pallas_call(
        kernel,
        out_shape=jax.ShapeDtypeStruct((B, Q, S, N), jnp.float32),
        grid=grid,
        in_specs=[pl.BlockSpec((1, S, blk, N), lambda bi, qi: (bi, 0, qi, 0))]
                 + [pl.BlockSpec(w.shape, _const_index_map(w.ndim)) for w in weights],
        out_specs=pl.BlockSpec((1, blk, S, N), lambda bi, qi: (bi, qi, 0, 0)),
        scratch_shapes=[
            pltpu.VMEM((S, blk, 8 * H), jnp.float32),   # fused fwd|bwd gate projections
            pltpu.VMEM((S, blk, 2 * H), jnp.float32),   # h written at slot s
            pltpu.VMEM((S, blk, 2 * H), jnp.float32),   # h written at slot S-1-s
        ],
        compiler_params=pltpu.CompilerParams(
            dimension_semantics=("parallel", "parallel"),
            vmem_limit_bytes=48 * 1024 * 1024),         # within v7x's 64 MiB physical
        cost_estimate=pl.CostEstimate(flops=flops, transcendentals=transc,
                                      bytes_accessed=bytes_acc),
    )(x, *weights)
    return out


# -----------------------------------------------------------------------------
# Parameters: PyTorch-layout init, then host-side packing for the fused kernel
# -----------------------------------------------------------------------------
def init_rnn_module_params(key, N, H):
    ks = jax.random.split(key, 12)
    s = 1.0 / float(H) ** 0.5
    sfc = 1.0 / float(2 * H) ** 0.5
    u = lambda k, shape, scale: jax.random.uniform(
        k, shape, jnp.float32, minval=-scale, maxval=scale)
    return dict(
        # small random affine so the GroupNorm affine path is exercised
        gn_gamma=jnp.ones((1, N), jnp.float32) + 0.05 * jax.random.normal(ks[10], (1, N)),
        gn_beta=0.05 * jax.random.normal(ks[11], (1, N)),
        w_ih_f=u(ks[0], (4 * H, N), s),
        w_hh_f=u(ks[1], (4 * H, H), s),
        b_f=u(ks[2], (1, 4 * H), s) + u(ks[3], (1, 4 * H), s),   # b_ih + b_hh
        w_ih_r=u(ks[4], (4 * H, N), s),
        w_hh_r=u(ks[5], (4 * H, H), s),
        b_r=u(ks[6], (1, 4 * H), s) + u(ks[7], (1, 4 * H), s),
        w_fc=u(ks[8], (N, 2 * H), sfc),
        b_fc=u(ks[9], (1, N), sfc),
    )


def pack_rnn_module_params(raw, N, H):
    """Pre-transpose & fuse fwd/bwd weights into the kernel's lane-dense layout."""
    zeros = jnp.zeros((H, H), jnp.float32)
    wih_cols, whh_cols, b_cols = [], [], []
    for g in range(4):                                   # PyTorch gate order i,f,g,o
        rg = slice(g * H, (g + 1) * H)
        wih_cols += [raw['w_ih_f'][rg].T, raw['w_ih_r'][rg].T]               # (N, H)
        whh_cols += [jnp.concatenate([raw['w_hh_f'][rg].T, zeros], axis=0),  # (2H, H)
                     jnp.concatenate([zeros, raw['w_hh_r'][rg].T], axis=0)]
        b_cols   += [raw['b_f'][:, rg], raw['b_r'][:, rg]]                    # (1, H)
    return dict(
        gn_gamma=raw['gn_gamma'], gn_beta=raw['gn_beta'],
        w_ih=jnp.concatenate(wih_cols, axis=1),   # (N, 8H)
        w_hh=jnp.concatenate(whh_cols, axis=1),   # (2H, 8H) block-diag per direction
        b_g=jnp.concatenate(b_cols, axis=1),      # (1, 8H)
        w_fc=raw['w_fc'].T,                       # (2H, N)
        b_fc=raw['b_fc'],                         # (1, N)
    )


def init_band_sequence_params(key, input_dim_size, hidden_dim_size,
                              num_layers, n_heads):
    N = input_dim_size // n_heads
    H = hidden_dim_size // n_heads
    layers = []
    for _ in range(num_layers):
        k_t, k_k, key = jax.random.split(key, 3)
        layers.append((init_rnn_module_params(k_t, N, H),
                       init_rnn_module_params(k_k, N, H)))
    return layers


def pack_band_sequence_params(raw_layers, N, H):
    return [(pack_rnn_module_params(rt, N, H), pack_rnn_module_params(rk, N, H))
            for rt, rk in raw_layers]


# -----------------------------------------------------------------------------
# Full BandSequenceModelModule forward (Pallas kernels)
# -----------------------------------------------------------------------------
def band_sequence_forward(x, layer_params, n_heads, H, G):
    b, c, t, f = x.shape
    N = c // n_heads
    # [b, c, t, f] -> canonical [B=b*nh, S=t, Q=f, N]
    xh = x.reshape(b * n_heads, N, t, f)
    xh = jnp.transpose(xh, (0, 2, 3, 1))
    for p_t, p_k in layer_params:
        xh = rnn_module_apply(xh, p_t, H, G)   # seq across time     -> [B, f, t, N]
        xh = rnn_module_apply(xh, p_k, H, G)   # seq across subbands -> [B, t, f, N]
    # [B, t, f, N] -> [b, c, t, f]
    xh = jnp.transpose(xh, (0, 3, 1, 2))
    return xh.reshape(b, c, t, f)


# -----------------------------------------------------------------------------
# Pure-JAX reference (mirrors the PyTorch module), used for a correctness check
# -----------------------------------------------------------------------------
def ref_rnn_module(x, raw, H, G, eps=1e-5):
    """One RNNModule on canonical [B, S, Q, N] input; returns [B, Q, S, N]."""
    B, S, Q, N = x.shape
    xb = jnp.transpose(x, (0, 2, 1, 3)).reshape(B * Q, S, N)     # (BQ, T, N)
    xg = jnp.transpose(xb, (0, 2, 1)).reshape(B * Q, G, N // G, S)
    mu = jnp.mean(xg, axis=(2, 3), keepdims=True)
    var = jnp.mean((xg - mu) ** 2, axis=(2, 3), keepdims=True)
    xg = (xg - mu) / jnp.sqrt(var + eps)
    xc = (xg.reshape(B * Q, N, S) * raw['gn_gamma'].reshape(1, N, 1)
          + raw['gn_beta'].reshape(1, N, 1))
    xn = jnp.transpose(xc, (0, 2, 1))                            # (BQ, T, N)

    def lstm_dir(seq, w_ih, w_hh, b):
        xp = jnp.einsum('btn,gn->btg', seq, w_ih) + b            # (BQ, T, 4H)
        def step(carry, g_t):
            h, c = carry
            g = g_t + h @ w_hh.T
            i = jax.nn.sigmoid(g[:, 0 * H:1 * H])
            f = jax.nn.sigmoid(g[:, 1 * H:2 * H])
            gg = jnp.tanh(g[:, 2 * H:3 * H])
            o = jax.nn.sigmoid(g[:, 3 * H:4 * H])
            c = f * c + i * gg
            h = o * jnp.tanh(c)
            return (h, c), h
        h0 = jnp.zeros((B * Q, H), jnp.float32)
        _, hs = lax.scan(step, (h0, h0), jnp.moveaxis(xp, 1, 0))
        return jnp.moveaxis(hs, 0, 1)                            # (BQ, T, H)

    hf = lstm_dir(xn, raw['w_ih_f'], raw['w_hh_f'], raw['b_f'])
    hr = lstm_dir(xn[:, ::-1], raw['w_ih_r'], raw['w_hh_r'], raw['b_r'])[:, ::-1]
    y = jnp.concatenate([hf, hr], axis=-1) @ raw['w_fc'].T + raw['b_fc']
    return y.reshape(B, Q, S, N) + jnp.transpose(x, (0, 2, 1, 3))


def band_sequence_reference(x, raw_layers, n_heads, H, G):
    b, c, t, f = x.shape
    N = c // n_heads
    xh = jnp.transpose(x.reshape(b * n_heads, N, t, f), (0, 2, 3, 1))
    for raw_t, raw_k in raw_layers:
        xh = ref_rnn_module(xh, raw_t, H, G)
        xh = ref_rnn_module(xh, raw_k, H, G)
    return jnp.transpose(xh, (0, 3, 1, 2)).reshape(b, c, t, f)


# -----------------------------------------------------------------------------
# Demo / correctness check
# -----------------------------------------------------------------------------
def run_config(cfg_idx, *, batch, n_features, time_steps, k_subbands,
               hidden_dim_size, n_heads, num_layers):
    N = n_features // n_heads
    H = hidden_dim_size // n_heads
    G = max(N // 16, 1)                          # group_num of the PyTorch module
    key = jax.random.fold_in(jax.random.PRNGKey(0), cfg_idx)
    k_x, k_p = jax.random.split(key)
    x = jax.random.normal(k_x, (batch, n_features, time_steps, k_subbands), jnp.float32)
    raw_layers = init_band_sequence_params(k_p, n_features, hidden_dim_size,
                                           num_layers, n_heads)
    packed_layers = pack_band_sequence_params(raw_layers, N, H)

    fwd = jax.jit(functools.partial(band_sequence_forward, n_heads=n_heads, H=H, G=G))
    out = jax.block_until_ready(fwd(x, packed_layers))

    ref_fn = jax.jit(functools.partial(band_sequence_reference, n_heads=n_heads, H=H, G=G))
    ref = jax.block_until_ready(ref_fn(x, raw_layers))

    assert out.shape == x.shape and out.dtype == jnp.float32
    assert bool(jnp.all(jnp.isfinite(out)))
    max_err = float(jnp.max(jnp.abs(out - ref)))
    assert max_err < 2e-3, f"config {cfg_idx}: max |err| vs reference = {max_err}"


if __name__ == "__main__":
    # Config A: input_dim_size=32, hidden_dim_size=32, n_heads=2 -> N=16, H=16, G=1
    run_config(0, batch=2, n_features=32, time_steps=8, k_subbands=8,
               hidden_dim_size=32, n_heads=2, num_layers=2)
    # Config B: exercises the grouped GroupNorm path (N=32 -> G=2) and H=32.
    run_config(1, batch=2, n_features=64, time_steps=8, k_subbands=8,
               hidden_dim_size=64, n_heads=2, num_layers=1)
    print("KERNEL_OK")
</pallas_src>

<mosaic_0001>
module attributes {stable_mosaic.version = 11 : i64} {
  func.func @kernel(%arg0: i32, %arg1: i32, %arg2: memref<1x8x8x16xf32, #tpu.memory_space<vmem>>, %arg3: memref<1x16xf32, #tpu.memory_space<vmem>>, %arg4: memref<1x16xf32, #tpu.memory_space<vmem>>, %arg5: memref<16x128xf32, #tpu.memory_space<vmem>>, %arg6: memref<32x128xf32, #tpu.memory_space<vmem>>, %arg7: memref<1x128xf32, #tpu.memory_space<vmem>>, %arg8: memref<32x16xf32, #tpu.memory_space<vmem>>, %arg9: memref<1x16xf32, #tpu.memory_space<vmem>>, %arg10: memref<1x8x8x16xf32, #tpu.memory_space<vmem>>, %arg11: memref<8x8x128xf32, #tpu.memory_space<vmem>>, %arg12: memref<8x8x32xf32, #tpu.memory_space<vmem>>, %arg13: memref<8x8x32xf32, #tpu.memory_space<vmem>>) attributes {dimension_semantics = [#tpu.dimension_semantics<parallel>, #tpu.dimension_semantics<parallel>], iteration_bounds = array<i64: 4, 1>, scalar_prefetch = 0 : i64, scratch_operands = 3 : i64, tpu.core_type = #tpu.core_type<tc>, window_params = [{transform_indices = @transform_0, window_bounds = array<i64: 1, 8, 8, 16>}, {pipeline_mode = #tpu.pipeline_mode<synchronous>, transform_indices = @transform_1, window_bounds = array<i64: 1, 16>}, {pipeline_mode = #tpu.pipeline_mode<synchronous>, transform_indices = @transform_2, window_bounds = array<i64: 1, 16>}, {pipeline_mode = #tpu.pipeline_mode<synchronous>, transform_indices = @transform_3, window_bounds = array<i64: 16, 128>}, {pipeline_mode = #tpu.pipeline_mode<synchronous>, transform_indices = @transform_4, window_bounds = array<i64: 32, 128>}, {pipeline_mode = #tpu.pipeline_mode<synchronous>, transform_indices = @transform_5, window_bounds = array<i64: 1, 128>}, {pipeline_mode = #tpu.pipeline_mode<synchronous>, transform_indices = @transform_6, window_bounds = array<i64: 32, 16>}, {pipeline_mode = #tpu.pipeline_mode<synchronous>, transform_indices = @transform_7, window_bounds = array<i64: 1, 16>}, {transform_indices = @transform_8, window_bounds = array<i64: 1, 8, 8, 16>}]} {
    %c0 = arith.constant 0 : index
    %c0_0 = arith.constant 0 : index
    %c0_1 = arith.constant 0 : index
    %c0_2 = arith.constant 0 : index
    %0 = vector.load %arg2[%c0, %c0_0, %c0_1, %c0_2] : memref<1x8x8x16xf32, #tpu.memory_space<vmem>>, vector<1x8x8x16xf32>
    %1 = vector.shape_cast %0 : vector<1x8x8x16xf32> to vector<8x8x16xf32>
    %cst = arith.constant dense<0.000000e+00> : vector<8xf32>
    %2 = vector.multi_reduction <add>, %1, %cst [0, 2] : vector<8x8x16xf32> to vector<8xf32>
    %3 = vector.shape_cast %2 : vector<8xf32> to vector<1x8x1xf32>
    %cst_3 = arith.constant 7.812500e-03 : f32
    %4 = vector.broadcast %cst_3 : f32 to vector<1x8x1xf32>
    %5 = arith.mulf %3, %4 : vector<1x8x1xf32>
    %6 = vector.broadcast %5 : vector<1x8x1xf32> to vector<8x8x16xf32>
    %7 = arith.subf %1, %6 : vector<8x8x16xf32>
    %8 = arith.mulf %7, %7 : vector<8x8x16xf32>
    %cst_4 = arith.constant dense<0.000000e+00> : vector<8xf32>
    %9 = vector.multi_reduction <add>, %8, %cst_4 [0, 2] : vector<8x8x16xf32> to vector<8xf32>
    %10 = vector.shape_cast %9 : vector<8xf32> to vector<1x8x1xf32>
    %cst_5 = arith.constant 7.812500e-03 : f32
    %11 = vector.broadcast %cst_5 : f32 to vector<1x8x1xf32>
    %12 = arith.mulf %10, %11 : vector<1x8x1xf32>
    %cst_6 = arith.constant 9.99999974E-6 : f32
    %13 = vector.broadcast %cst_6 : f32 to vector<1x8x1xf32>
    %14 = arith.addf %12, %13 : vector<1x8x1xf32>
    %15 = math.rsqrt %14 : vector<1x8x1xf32>
    %16 = vector.broadcast %15 : vector<1x8x1xf32> to vector<8x8x16xf32>
    %17 = arith.mulf %7, %16 : vector<8x8x16xf32>
    %c0_7 = arith.constant 0 : index
    %c0_8 = arith.constant 0 : index
    %18 = vector.load %arg3[%c0_7, %c0_8] : memref<1x16xf32, #tpu.memory_space<vmem>>, vector<1x16xf32>
    %19 = vector.shape_cast %18 : vector<1x16xf32> to vector<1x1x16xf32>
    %20 = vector.broadcast %19 : vector<1x1x16xf32> to vector<8x8x16xf32>
    %21 = arith.mulf %17, %20 : vector<8x8x16xf32>
    %c0_9 = arith.constant 0 : index
    %c0_10 = arith.constant 0 : index
    %22 = vector.load %arg4[%c0_9, %c0_10] : memref<1x16xf32, #tpu.memory_space<vmem>>, vector<1x16xf32>
    %23 = vector.shape_cast %22 : vector<1x16xf32> to vector<1x1x16xf32>
    %24 = vector.broadcast %23 : vector<1x1x16xf32> to vector<8x8x16xf32>
    %25 = arith.addf %21, %24 : vector<8x8x16xf32>
    %26 = vector.shape_cast %25 : vector<8x8x16xf32> to vector<64x16xf32>
    %c0_11 = arith.constant 0 : index
    %c0_12 = arith.constant 0 : index
    %27 = vector.load %arg5[%c0_11, %c0_12] : memref<16x128xf32, #tpu.memory_space<vmem>>, vector<16x128xf32>
    %cst_13 = arith.constant dense<0.000000e+00> : vector<64x128xf32>
    %28 = tpu.matmul %26, %27, %cst_13 {dimension_numbers = #tpu.dot_dimension_numbers<[1], [0], [0], [1], [0, 0, 1, 1], [], []>} : vector<64x16xf32>, vector<16x128xf32>, vector<64x128xf32> -> vector<64x128xf32>
    %c0_14 = arith.constant 0 : index
    %c0_15 = arith.constant 0 : index
    %29 = vector.load %arg7[%c0_14, %c0_15] : memref<1x128xf32, #tpu.memory_space<vmem>>, vector<1x128xf32>
    %30 = vector.broadcast %29 : vector<1x128xf32> to vector<64x128xf32>
    %31 = arith.addf %28, %30 : vector<64x128xf32>
    %32 = vector.shape_cast %31 : vector<64x128xf32> to vector<8x8x128xf32>
    %c0_16 = arith.constant 0 : index
    %c0_17 = arith.constant 0 : index
    %c0_18 = arith.constant 0 : index
    %33 = vector.load %arg11[%c0_16, %c0_17, %c0_18] : memref<8x8x128xf32, #tpu.memory_space<vmem>>, vector<8x8x128xf32>
    tpu.vector_store %arg11[%c0_16, %c0_17, %c0_18], %32 {strides = array<i32>} : memref<8x8x128xf32, #tpu.memory_space<vmem>>, vector<8x8x128xf32>,
    %c0_19 = arith.constant 0 : index
    %c0_20 = arith.constant 0 : index
    %34 = vector.load %arg6[%c0_19, %c0_20] : memref<32x128xf32, #tpu.memory_space<vmem>>, vector<32x128xf32>
    %35 = tpu.iota {dimensions = array<i32: 1>} : vector<8x128xi32>
    %c32_i32 = arith.constant 32 : i32
    %c0_i32 = arith.constant 0 : i32
    %36 = arith.cmpi eq, %c32_i32, %c0_i32 : i32
    %c1_i32 = arith.constant 1 : i32
    %37 = arith.select %36, %c1_i32, %c32_i32 : i32
    %38 = vector.broadcast %37 : i32 to vector<8x128xi32>
    %39 = arith.remsi %35, %38 : vector<8x128xi32>
    %c0_i32_21 = arith.constant 0 : i32
    %40 = vector.broadcast %c0_i32_21 : i32 to vector<8x128xi32>
    %41 = arith.cmpi ne, %39, %40 : vector<8x128xi32>
    %c0_i32_22 = arith.constant 0 : i32
    %42 = vector.broadcast %c0_i32_22 : i32 to vector<8x128xi32>
    %43 = arith.cmpi slt, %39, %42 : vector<8x128xi32>
    %c0_i32_23 = arith.constant 0 : i32
    %44 = arith.cmpi slt, %37, %c0_i32_23 : i32
    %45 = vector.broadcast %44 : i1 to vector<8x128xi1>
    %46 = vector.broadcast %45 : vector<8x128xi1> to vector<8x128xi1>
    %47 = arith.xori %43, %46 : vector<8x128xi1>
    %48 = arith.andi %47, %41 : vector<8x128xi1>
    %49 = vector.broadcast %37 : i32 to vector<8x128xi32>
    %50 = arith.addi %39, %49 : vector<8x128xi32>
    %51 = arith.select %48, %50, %39 : vector<8x128xi1>, vector<8x128xi32>
    %c16_i32 = arith.constant 16 : i32
    %52 = vector.broadcast %c16_i32 : i32 to vector<8x128xi32>
    %53 = arith.cmpi slt, %51, %52 : vector<8x128xi32>
    %cst_24 = arith.constant 0.000000e+00 : f32
    %54 = vector.broadcast %cst_24 : f32 to vector<8x32xf32>
    %c0_i32_25 = arith.constant 0 : i32
    %55 = arith.index_cast %c0_i32_25 : i32 to index
    %c0_26 = arith.constant 0 : index
    %c0_27 = arith.constant 0 : index
    %56 = vector.load %arg11[%55, %c0_26, %c0_27] : memref<8x8x128xf32, #tpu.memory_space<vmem>>, vector<1x8x128xf32>
    %57 = vector.shape_cast %56 : vector<1x8x128xf32> to vector<8x128xf32>
    %c7_i32 = arith.constant 7 : i32
    %58 = arith.subi %c7_i32, %c0_i32_25 : i32
    %59 = arith.index_cast %58 : i32 to index
    %c0_28 = arith.constant 0 : index
    %c0_29 = arith.constant 0 : index
    %60 = vector.load %arg11[%59, %c0_28, %c0_29] : memref<8x8x128xf32, #tpu.memory_space<vmem>>, vector<1x8x128xf32>
    %61 = vector.shape_cast %60 : vector<1x8x128xf32> to vector<8x128xf32>
    %62 = arith.select %53, %57, %61 : vector<8x128xi1>, vector<8x128xf32>
    %cst_30 = arith.constant dense<0.000000e+00> : vector<8x128xf32>
    %63 = tpu.matmul %54, %34, %cst_30 {dimension_numbers = #tpu.dot_dimension_numbers<[1], [0], [0], [1], [0, 0, 1, 1], [], []>} : vector<8x32xf32>, vector<32x128xf32>, vector<8x128xf32> -> vector<8x128xf32>
    %64 = arith.addf %62, %63 : vector<8x128xf32>
    %65 = vector.extract_strided_slice %64 {offsets = [0, 0], sizes = [8, 32], strides = [1, 1]} : vector<8x128xf32> to vector<8x32xf32>
    %66 = arith.negf %65 : vector<8x32xf32>
    %67 = math.exp %66 : vector<8x32xf32>
    %cst_31 = arith.constant 1.000000e+00 : f32
    %68 = vector.broadcast %cst_31 : f32 to vector<8x32xf32>
    %69 = arith.addf %68, %67 : vector<8x32xf32>
    %70 = arith.divf %68, %69 : vector<8x32xf32>
    %71 = vector.extract_strided_slice %64 {offsets = [0, 32], sizes = [8, 32], strides = [1, 1]} : vector<8x128xf32> to vector<8x32xf32>
    %72 = arith.negf %71 : vector<8x32xf32>
    %73 = math.exp %72 : vector<8x32xf32>
    %cst_32 = arith.constant 1.000000e+00 : f32
    %74 = vector.broadcast %cst_32 : f32 to vector<8x32xf32>
    %75 = arith.addf %74, %73 : vector<8x32xf32>
    %76 = arith.divf %74, %75 : vector<8x32xf32>
    %77 = vector.extract_strided_slice %64 {offsets = [0, 64], sizes = [8, 32], strides = [1, 1]} : vector<8x128xf32> to vector<8x32xf32>
    %78 = math.tanh %77 : vector<8x32xf32>
    %79 = vector.extract_strided_slice %64 {offsets = [0, 96], sizes = [8, 32], strides = [1, 1]} : vector<8x128xf32> to vector<8x32xf32>
    %80 = arith.negf %79 : vector<8x32xf32>
    %81 = math.exp %80 : vector<8x32xf32>
    %cst_33 = arith.constant 1.000000e+00 : f32
    %82 = vector.broadcast %cst_33 : f32 to vector<8x32xf32>
    %83 = arith.addf %82, %81 : vector<8x32xf32>
    %84 = arith.divf %82, %83 : vector<8x32xf32>
    %85 = arith.mulf %76, %54 : vector<8x32xf32>
    %86 = arith.mulf %70, %78 : vector<8x32xf32>
    %87 = arith.addf %85, %86 : vector<8x32xf32>
    %88 = math.tanh %87 : vector<8x32xf32>
    %89 = arith.mulf %84, %88 : vector<8x32xf32>
    %90 = arith.index_cast %c0_i32_25 : i32 to index
    %c0_34 = arith.constant 0 : index
    %c0_35 = arith.constant 0 : index
    %91 = vector.load %arg12[%90, %c0_34, %c0_35] : memref<8x8x32xf32, #tpu.memory_space<vmem>>, vector<1x8x32xf32>
    %92 = vector.shape_cast %91 : vector<1x8x32xf32> to vector<8x32xf32>
    %93 = vector.shape_cast %89 : vector<8x32xf32> to vector<1x8x32xf32>
    tpu.vector_store %arg12[%90, %c0_34, %c0_35], %93 {strides = array<i32>} : memref<8x8x32xf32, #tpu.memory_space<vmem>>, vector<1x8x32xf32>,
    %c7_i32_36 = arith.constant 7 : i32
    %94 = arith.subi %c7_i32_36, %c0_i32_25 : i32
    %95 = arith.index_cast %94 : i32 to index
    %c0_37 = arith.constant 0 : index
    %c0_38 = arith.constant 0 : index
    %96 = vector.load %arg13[%95, %c0_37, %c0_38] : memref<8x8x32xf32, #tpu.memory_space<vmem>>, vector<1x8x32xf32>
    %97 = vector.shape_cast %96 : vector<1x8x32xf32> to vector<8x32xf32>
    %98 = vector.shape_cast %89 : vector<8x32xf32> to vector<1x8x32xf32>
    tpu.vector_store %arg13[%95, %c0_37, %c0_38], %98 {strides = array<i32>} : memref<8x8x32xf32, #tpu.memory_space<vmem>>, vector<1x8x32xf32>,
    %c1_i32_39 = arith.constant 1 : i32
    %99 = arith.index_cast %c1_i32_39 : i32 to index
    %c0_40 = arith.constant 0 : index
    %c0_41 = arith.constant 0 : index
    %100 = vector.load %arg11[%99, %c0_40, %c0_41] : memref<8x8x128xf32, #tpu.memory_space<vmem>>, vector<1x8x128xf32>
    %101 = vector.shape_cast %100 : vector<1x8x128xf32> to vector<8x128xf32>
    %c7_i32_42 = arith.constant 7 : i32
    %102 = arith.subi %c7_i32_42, %c1_i32_39 : i32
    %103 = arith.index_cast %102 : i32 to index
    %c0_43 = arith.constant 0 : index
    %c0_44 = arith.constant 0 : index
    %104 = vector.load %arg11[%103, %c0_43, %c0_44] : memref<8x8x128xf32, #tpu.memory_space<vmem>>, vector<1x8x128xf32>
    %105 = vector.shape_cast %104 : vector<1x8x128xf32> to vector<8x128xf32>
    %106 = arith.select %53, %101, %105 : vector<8x128xi1>, vector<8x128xf32>
    %cst_45 = arith.constant dense<0.000000e+00> : vector<8x128xf32>
    %107 = tpu.matmul %89, %34, %cst_45 {dimension_numbers = #tpu.dot_dimension_numbers<[1], [0], [0], [1], [0, 0, 1, 1], [], []>} : vector<8x32xf32>, vector<32x128xf32>, vector<8x128xf32> -> vector<8x128xf32>
    %108 = arith.addf %106, %107 : vector<8x128xf32>
    %109 = vector.extract_strided_slice %108 {offsets = [0, 0], sizes = [8, 32], strides = [1, 1]} : vector<8x128xf32> to vector<8x32xf32>
    %110 = arith.negf %109 : vector<8x32xf32>
    %111 = math.exp %110 : vector<8x32xf32>
    %cst_46 = arith.constant 1.000000e+00 : f32
    %112 = vector.broadcast %cst_46 : f32 to vector<8x32xf32>
    %113 = arith.addf %112, %111 : vector<8x32xf32>
    %114 = arith.divf %112, %113 : vector<8x32xf32>
    %115 = vector.extract_strided_slice %108 {offsets = [0, 32], sizes = [8, 32], strides = [1, 1]} : vector<8x128xf32> to vector<8x32xf32>
    %116 = arith.negf %115 : vector<8x32xf32>
    %117 = math.exp %116 : vector<8x32xf32>
    %cst_47 = arith.constant 1.000000e+00 : f32
    %118 = vector.broadcast %cst_47 : f32 to vector<8x32xf32>
    %119 = arith.addf %118, %117 : vector<8x32xf32>
    %120 = arith.divf %118, %119 : vector<8x32xf32>
    %121 = vector.extract_strided_slice %108 {offsets = [0, 64], sizes = [8, 32], strides = [1, 1]} : vector<8x128xf32> to vector<8x32xf32>
    %122 = math.tanh %121 : vector<8x32xf32>
    %123 = vector.extract_strided_slice %108 {offsets = [0, 96], sizes = [8, 32], strides = [1, 1]} : vector<8x128xf32> to vector<8x32xf32>
    %124 = arith.negf %123 : vector<8x32xf32>
    %125 = math.exp %124 : vector<8x32xf32>
    %cst_48 = arith.constant 1.000000e+00 : f32
    %126 = vector.broadcast %cst_48 : f32 to vector<8x32xf32>
    %127 = arith.addf %126, %125 : vector<8x32xf32>
    %128 = arith.divf %126, %127 : vector<8x32xf32>
    %129 = arith.mulf %120, %87 : vector<8x32xf32>
    %130 = arith.mulf %114, %122 : vector<8x32xf32>
    %131 = arith.addf %129, %130 : vector<8x32xf32>
    %132 = math.tanh %131 : vector<8x32xf32>
    %133 = arith.mulf %128, %132 : vector<8x32xf32>
    %134 = arith.index_cast %c1_i32_39 : i32 to index
    %c0_49 = arith.constant 0 : index
    %c0_50 = arith.constant 0 : index
    %135 = vector.load %arg12[%134, %c0_49, %c0_50] : memref<8x8x32xf32, #tpu.memory_space<vmem>>, vector<1x8x32xf32>
    %136 = vector.shape_cast %135 : vector<1x8x32xf32> to vector<8x32xf32>
    %137 = vector.shape_cast %133 : vector<8x32xf32> to vector<1x8x32xf32>
    tpu.vector_store %arg12[%134, %c0_49, %c0_50], %137 {strides = array<i32>} : memref<8x8x32xf32, #tpu.memory_space<vmem>>, vector<1x8x32xf32>,
    %c7_i32_51 = arith.constant 7 : i32
    %138 = arith.subi %c7_i32_51, %c1_i32_39 : i32
    %139 = arith.index_cast %138 : i32 to index
    %c0_52 = arith.constant 0 : index
    %c0_53 = arith.constant 0 : index
    %140 = vector.load %arg13[%139, %c0_52, %c0_53] : memref<8x8x32xf32, #tpu.memory_space<vmem>>, vector<1x8x32xf32>
    %141 = vector.shape_cast %140 : vector<1x8x32xf32> to vector<8x32xf32>
    %142 = vector.shape_cast %133 : vector<8x32xf32> to vector<1x8x32xf32>
    tpu.vector_store %arg13[%139, %c0_52, %c0_53], %142 {strides = array<i32>} : memref<8x8x32xf32, #tpu.memory_space<vmem>>, vector<1x8x32xf32>,
    %c2_i32 = arith.constant 2 : i32
    %143 = arith.index_cast %c2_i32 : i32 to index
    %c0_54 = arith.constant 0 : index
    %c0_55 = arith.constant 0 : index
    %144 = vector.load %arg11[%143, %c0_54, %c0_55] : memref<8x8x128xf32, #tpu.memory_space<vmem>>, vector<1x8x128xf32>
    %145 = vector.shape_cast %144 : vector<1x8x128xf32> to vector<8x128xf32>
    %c7_i32_56 = arith.constant 7 : i32
    %146 = arith.subi %c7_i32_56, %c2_i32 : i32
    %147 = arith.index_cast %146 : i32 to index
    %c0_57 = arith.constant 0 : index
    %c0_58 = arith.constant 0 : index
    %148 = vector.load %arg11[%147, %c0_57, %c0_58] : memref<8x8x128xf32, #tpu.memory_space<vmem>>, vector<1x8x128xf32>
    %149 = vector.shape_cast %148 : vector<1x8x128xf32> to vector<8x128xf32>
    %150 = arith.select %53, %145, %149 : vector<8x128xi1>, vector<8x128xf32>
    %cst_59 = arith.constant dense<0.000000e+00> : vector<8x128xf32>
    %151 = tpu.matmul %133, %34, %cst_59 {dimension_numbers = #tpu.dot_dimension_numbers<[1], [0], [0], [1], [0, 0, 1, 1], [], []>} : vector<8x32xf32>, vector<32x128xf32>, vector<8x128xf32> -> vector<8x128xf32>
    %152 = arith.addf %150, %151 : vector<8x128xf32>
    %153 = vector.extract_strided_slice %152 {offsets = [0, 0], sizes = [8, 32], strides = [1, 1]} : vector<8x128xf32> to vector<8x32xf32>
    %154 = arith.negf %153 : vector<8x32xf32>
    %155 = math.exp %154 : vector<8x32xf32>
    %cst_60 = arith.constant 1.000000e+00 : f32
    %156 = vector.broadcast %cst_60 : f32 to vector<8x32xf32>
    %157 = arith.addf %156, %155 : vector<8x32xf32>
    %158 = arith.divf %156, %157 : vector<8x32xf32>
    %159 = vector.extract_strided_slice %152 {offsets = [0, 32], sizes = [8, 32], strides = [1, 1]} : vector<8x128xf32> to vector<8x32xf32>
    %160 = arith.negf %159 : vector<8x32xf32>
    %161 = math.exp %160 : vector<8x32xf32>
    %cst_61 = arith.constant 1.000000e+00 : f32
    %162 = vector.broadcast %cst_61 : f32 to vector<8x32xf32>
    %163 = arith.addf %162, %161 : vector<8x32xf32>
    %164 = arith.divf %162, %163 : vector<8x32xf32>
    %165 = vector.extract_strided_slice %152 {offsets = [0, 64], sizes = [8, 32], strides = [1, 1]} : vector<8x128xf32> to vector<8x32xf32>
    %166 = math.tanh %165 : vector<8x32xf32>
    %167 = vector.extract_strided_slice %152 {offsets = [0, 96], sizes = [8, 32], strides = [1, 1]} : vector<8x128xf32> to vector<8x32xf32>
    %168 = arith.negf %167 : vector<8x32xf32>
    %169 = math.exp %168 : vector<8x32xf32>
    %cst_62 = arith.constant 1.000000e+00 : f32
    %170 = vector.broadcast %cst_62 : f32 to vector<8x32xf32>
    %171 = arith.addf %170, %169 : vector<8x32xf32>
    %172 = arith.divf %170, %171 : vector<8x32xf32>
    %173 = arith.mulf %164, %131 : vector<8x32xf32>
    %174 = arith.mulf %158, %166 : vector<8x32xf32>
    %175 = arith.addf %173, %174 : vector<8x32xf32>
    %176 = math.tanh %175 : vector<8x32xf32>
    %177 = arith.mulf %172, %176 : vector<8x32xf32>
    %178 = arith.index_cast %c2_i32 : i32 to index
    %c0_63 = arith.constant 0 : index
    %c0_64 = arith.constant 0 : index
    %179 = vector.load %arg12[%178, %c0_63, %c0_64] : memref<8x8x32xf32, #tpu.memory_space<vmem>>, vector<1x8x32xf32>
    %180 = vector.shape_cast %179 : vector<1x8x32xf32> to vector<8x32xf32>
    %181 = vector.shape_cast %177 : vector<8x32xf32> to vector<1x8x32xf32>
    tpu.vector_store %arg12[%178, %c0_63, %c0_64], %181 {strides = array<i32>} : memref<8x8x32xf32, #tpu.memory_space<vmem>>, vector<1x8x32xf32>,
    %c7_i32_65 = arith.constant 7 : i32
    %182 = arith.subi %c7_i32_65, %c2_i32 : i32
    %183 = arith.index_cast %182 : i32 to index
    %c0_66 = arith.constant 0 : index
    %c0_67 = arith.constant 0 : index
    %184 = vector.load %arg13[%183, %c0_66, %c0_67] : memref<8x8x32xf32, #tpu.memory_space<vmem>>, vector<1x8x32xf32>
    %185 = vector.shape_cast %184 : vector<1x8x32xf32> to vector<8x32xf32>
    %186 = vector.shape_cast %177 : vector<8x32xf32> to vector<1x8x32xf32>
    tpu.vector_store %arg13[%183, %c0_66, %c0_67], %186 {strides = array<i32>} : memref<8x8x32xf32, #tpu.memory_space<vmem>>, vector<1x8x32xf32>,
    %c3_i32 = arith.constant 3 : i32
    %187 = arith.index_cast %c3_i32 : i32 to index
    %c0_68 = arith.constant 0 : index
    %c0_69 = arith.constant 0 : index
    %188 = vector.load %arg11[%187, %c0_68, %c0_69] : memref<8x8x128xf32, #tpu.memory_space<vmem>>, vector<1x8x128xf32>
    %189 = vector.shape_cast %188 : vector<1x8x128xf32> to vector<8x128xf32>
    %c7_i32_70 = arith.constant 7 : i32
    %190 = arith.subi %c7_i32_70, %c3_i32 : i32
    %191 = arith.index_cast %190 : i32 to index
    %c0_71 = arith.constant 0 : index
    %c0_72 = arith.constant 0 : index
    %192 = vector.load %arg11[%191, %c0_71, %c0_72] : memref<8x8x128xf32, #tpu.memory_space<vmem>>, vector<1x8x128xf32>
    %193 = vector.shape_cast %192 : vector<1x8x128xf32> to vector<8x128xf32>
    %194 = arith.select %53, %189, %193 : vector<8x128xi1>, vector<8x128xf32>
    %cst_73 = arith.constant dense<0.000000e+00> : vector<8x128xf32>
    %195 = tpu.matmul %177, %34, %cst_73 {dimension_numbers = #tpu.dot_dimension_numbers<[1], [0], [0], [1], [0, 0, 1, 1], [], []>} : vector<8x32xf32>, vector<32x128xf32>, vector<8x128xf32> -> vector<8x128xf32>
    %196 = arith.addf %194, %195 : vector<8x128xf32>
    %197 = vector.extract_strided_slice %196 {offsets = [0, 0], sizes = [8, 32], strides = [1, 1]} : vector<8x128xf32> to vector<8x32xf32>
    %198 = arith.negf %197 : vector<8x32xf32>
    %199 = math.exp %198 : vector<8x32xf32>
    %cst_74 = arith.constant 1.000000e+00 : f32
    %200 = vector.broadcast %cst_74 : f32 to vector<8x32xf32>
    %201 = arith.addf %200, %199 : vector<8x32xf32>
    %202 = arith.divf %200, %201 : vector<8x32xf32>
    %203 = vector.extract_strided_slice %196 {offsets = [0, 32], sizes = [8, 32], strides = [1, 1]} : vector<8x128xf32> to vector<8x32xf32>
    %204 = arith.negf %203 : vector<8x32xf32>
    %205 = math.exp %204 : vector<8x32xf32>
    %cst_75 = arith.constant 1.000000e+00 : f32
    %206 = vector.broadcast %cst_75 : f32 to vector<8x32xf32>
    %207 = arith.addf %206, %205 : vector<8x32xf32>
    %208 = arith.divf %206, %207 : vector<8x32xf32>
    %209 = vector.extract_strided_slice %196 {offsets = [0, 64], sizes = [8, 32], strides = [1, 1]} : vector<8x128xf32> to vector<8x32xf32>
    %210 = math.tanh %209 : vector<8x32xf32>
    %211 = vector.extract_strided_slice %196 {offsets = [0, 96], sizes = [8, 32], strides = [1, 1]} : vector<8x128xf32> to vector<8x32xf32>
    %212 = arith.negf %211 : vector<8x32xf32>
    %213 = math.exp %212 : vector<8x32xf32>
    %cst_76 = arith.constant 1.000000e+00 : f32
    %214 = vector.broadcast %cst_76 : f32 to vector<8x32xf32>
    %215 = arith.addf %214, %213 : vector<8x32xf32>
    %216 = arith.divf %214, %215 : vector<8x32xf32>
    %217 = arith.mulf %208, %175 : vector<8x32xf32>
    %218 = arith.mulf %202, %210 : vector<8x32xf32>
    %219 = arith.addf %217, %218 : vector<8x32xf32>
    %220 = math.tanh %219 : vector<8x32xf32>
    %221 = arith.mulf %216, %220 : vector<8x32xf32>
    %222 = arith.index_cast %c3_i32 : i32 to index
    %c0_77 = arith.constant 0 : index
    %c0_78 = arith.constant 0 : index
    %223 = vector.load %arg12[%222, %c0_77, %c0_78] : memref<8x8x32xf32, #tpu.memory_space<vmem>>, vector<1x8x32xf32>
    %224 = vector.shape_cast %223 : vector<1x8x32xf32> to vector<8x32xf32>
    %225 = vector.shape_cast %221 : vector<8x32xf32> to vector<1x8x32xf32>
    tpu.vector_store %arg12[%222, %c0_77, %c0_78], %225 {strides = array<i32>} : memref<8x8x32xf32, #tpu.memory_space<vmem>>, vector<1x8x32xf32>,
    %c7_i32_79 = arith.constant 7 : i32
    %226 = arith.subi %c7_i32_79, %c3_i32 : i32
    %227 = arith.index_cast %226 : i32 to index
    %c0_80 = arith.constant 0 : index
    %c0_81 = arith.constant 0 : index
    %228 = vector.load %arg13[%227, %c0_80, %c0_81] : memref<8x8x32xf32, #tpu.memory_space<vmem>>, vector<1x8x32xf32>
    %229 = vector.shape_cast %228 : vector<1x8x32xf32> to vector<8x32xf32>
    %230 = vector.shape_cast %221 : vector<8x32xf32> to vector<1x8x32xf32>
    tpu.vector_store %arg13[%227, %c0_80, %c0_81], %230 {strides = array<i32>} : memref<8x8x32xf32, #tpu.memory_space<vmem>>, vector<1x8x32xf32>,
    %c4_i32 = arith.constant 4 : i32
    %231 = arith.index_cast %c4_i32 : i32 to index
    %c0_82 = arith.constant 0 : index
    %c0_83 = arith.constant 0 : index
    %232 = vector.load %arg11[%231, %c0_82, %c0_83] : memref<8x8x128xf32, #tpu.memory_space<vmem>>, vector<1x8x128xf32>
    %233 = vector.shape_cast %232 : vector<1x8x128xf32> to vector<8x128xf32>
    %c7_i32_84 = arith.constant 7 : i32
    %234 = arith.subi %c7_i32_84, %c4_i32 : i32
    %235 = arith.index_cast %234 : i32 to index
    %c0_85 = arith.constant 0 : index
    %c0_86 = arith.constant 0 : index
    %236 = vector.load %arg11[%235, %c0_85, %c0_86] : memref<8x8x128xf32, #tpu.memory_space<vmem>>, vector<1x8x128xf32>
    %237 = vector.shape_cast %236 : vector<1x8x128xf32> to vector<8x128xf32>
    %238 = arith.select %53, %233, %237 : vector<8x128xi1>, vector<8x128xf32>
    %cst_87 = arith.constant dense<0.000000e+00> : vector<8x128xf32>
    %239 = tpu.matmul %221, %34, %cst_87 {dimension_numbers = #tpu.dot_dimension_numbers<[1], [0], [0], [1], [0, 0, 1, 1], [], []>} : vector<8x32xf32>, vector<32x128xf32>, vector<8x128xf32> -> vector<8x128xf32>
    %240 = arith.addf %238, %239 : vector<8x128xf32>
    %241 = vector.extract_strided_slice %240 {offsets = [0, 0], sizes = [8, 32], strides = [1, 1]} : vector<8x128xf32> to vector<8x32xf32>
    %242 = arith.negf %241 : vector<8x32xf32>
    %243 = math.exp %242 : vector<8x32xf32>
    %cst_88 = arith.constant 1.000000e+00 : f32
    %244 = vector.broadcast %cst_88 : f32 to vector<8x32xf32>
    %245 = arith.addf %244, %243 : vector<8x32xf32>
    %246 = arith.divf %244, %245 : vector<8x32xf32>
    %247 = vector.extract_strided_slice %240 {offsets = [0, 32], sizes = [8, 32], strides = [1, 1]} : vector<8x128xf32> to vector<8x32xf32>
    %248 = arith.negf %247 : vector<8x32xf32>
    %249 = math.exp %248 : vector<8x32xf32>
    %cst_89 = arith.constant 1.000000e+00 : f32
    %250 = vector.broadcast %cst_89 : f32 to vector<8x32xf32>
    %251 = arith.addf %250, %249 : vector<8x32xf32>
    %252 = arith.divf %250, %251 : vector<8x32xf32>
    %253 = vector.extract_strided_slice %240 {offsets = [0, 64], sizes = [8, 32], strides = [1, 1]} : vector<8x128xf32> to vector<8x32xf32>
    %254 = math.tanh %253 : vector<8x32xf32>
    %255 = vector.extract_strided_slice %240 {offsets = [0, 96], sizes = [8, 32], strides = [1, 1]} : vector<8x128xf32> to vector<8x32xf32>
    %256 = arith.negf %255 : vector<8x32xf32>
    %257 = math.exp %256 : vector<8x32xf32>
    %cst_90 = arith.constant 1.000000e+00 : f32
    %258 = vector.broadcast %cst_90 : f32 to vector<8x32xf32>
    %259 = arith.addf %258, %257 : vector<8x32xf32>
    %260 = arith.divf %258, %259 : vector<8x32xf32>
    %261 = arith.mulf %252, %219 : vector<8x32xf32>
    %262 = arith.mulf %246, %254 : vector<8x32xf32>
    %263 = arith.addf %261, %262 : vector<8x32xf32>
    %264 = math.tanh %263 : vector<8x32xf32>
    %265 = arith.mulf %260, %264 : vector<8x32xf32>
    %266 = arith.index_cast %c4_i32 : i32 to index
    %c0_91 = arith.constant 0 : index
    %c0_92 = arith.constant 0 : index
    %267 = vector.load %arg12[%266, %c0_91, %c0_92] : memref<8x8x32xf32, #tpu.memory_space<vmem>>, vector<1x8x32xf32>
    %268 = vector.shape_cast %267 : vector<1x8x32xf32> to vector<8x32xf32>
    %269 = vector.shape_cast %265 : vector<8x32xf32> to vector<1x8x32xf32>
    tpu.vector_store %arg12[%266, %c0_91, %c0_92], %269 {strides = array<i32>} : memref<8x8x32xf32, #tpu.memory_space<vmem>>, vector<1x8x32xf32>,
    %c7_i32_93 = arith.constant 7 : i32
    %270 = arith.subi %c7_i32_93, %c4_i32 : i32
    %271 = arith.index_cast %270 : i32 to index
    %c0_94 = arith.constant 0 : index
    %c0_95 = arith.constant 0 : index
    %272 = vector.load %arg13[%271, %c0_94, %c0_95] : memref<8x8x32xf32, #tpu.memory_space<vmem>>, vector<1x8x32xf32>
    %273 = vector.shape_cast %272 : vector<1x8x32xf32> to vector<8x32xf32>
    %274 = vector.shape_cast %265 : vector<8x32xf32> to vector<1x8x32xf32>
    tpu.vector_store %arg13[%271, %c0_94, %c0_95], %274 {strides = array<i32>} : memref<8x8x32xf32, #tpu.memory_space<vmem>>, vector<1x8x32xf32>,
    %c5_i32 = arith.constant 5 : i32
    %275 = arith.index_cast %c5_i32 : i32 to index
    %c0_96 = arith.constant 0 : index
    %c0_97 = arith.constant 0 : index
    %276 = vector.load %arg11[%275, %c0_96, %c0_97] : memref<8x8x128xf32, #tpu.memory_space<vmem>>, vector<1x8x128xf32>
    %277 = vector.shape_cast %276 : vector<1x8x128xf32> to vector<8x128xf32>
    %c7_i32_98 = arith.constant 7 : i32
    %278 = arith.subi %c7_i32_98, %c5_i32 : i32
    %279 = arith.index_cast %278 : i32 to index
    %c0_99 = arith.constant 0 : index
    %c0_100 = arith.constant 0 : index
    %280 = vector.load %arg11[%279, %c0_99, %c0_100] : memref<8x8x128xf32, #tpu.memory_space<vmem>>, vector<1x8x128xf32>
    %281 = vector.shape_cast %280 : vector<1x8x128xf32> to vector<8x128xf32>
    %282 = arith.select %53, %277, %281 : vector<8x128xi1>, vector<8x128xf32>
    %cst_101 = arith.constant dense<0.000000e+00> : vector<8x128xf32>
    %283 = tpu.matmul %265, %34, %cst_101 {dimension_numbers = #tpu.dot_dimension_numbers<[1], [0], [0], [1], [0, 0, 1, 1], [], []>} : vector<8x32xf32>, vector<32x128xf32>, vector<8x128xf32> -> vector<8x128xf32>
    %284 = arith.addf %282, %283 : vector<8x128xf32>
    %285 = vector.extract_strided_slice %284 {offsets = [0, 0], sizes = [8, 32], strides = [1, 1]} : vector<8x128xf32> to vector<8x32xf32>
    %286 = arith.negf %285 : vector<8x32xf32>
    %287 = math.exp %286 : vector<8x32xf32>
    %cst_102 = arith.constant 1.000000e+00 : f32
    %288 = vector.broadcast %cst_102 : f32 to vector<8x32xf32>
    %289 = arith.addf %288, %287 : vector<8x32xf32>
    %290 = arith.divf %288, %289 : vector<8x32xf32>
    %291 = vector.extract_strided_slice %284 {offsets = [0, 32], sizes = [8, 32], strides = [1, 1]} : vector<8x128xf32> to vector<8x32xf32>
    %292 = arith.negf %291 : vector<8x32xf32>
    %293 = math.exp %292 : vector<8x32xf32>
    %cst_103 = arith.constant 1.000000e+00 : f32
    %294 = vector.broadcast %cst_103 : f32 to vector<8x32xf32>
    %295 = arith.addf %294, %293 : vector<8x32xf32>
    %296 = arith.divf %294, %295 : vector<8x32xf32>
    %297 = vector.extract_strided_slice %284 {offsets = [0, 64], sizes = [8, 32], strides = [1, 1]} : vector<8x128xf32> to vector<8x32xf32>
    %298 = math.tanh %297 : vector<8x32xf32>
    %299 = vector.extract_strided_slice %284 {offsets = [0, 96], sizes = [8, 32], strides = [1, 1]} : vector<8x128xf32> to vector<8x32xf32>
    %300 = arith.negf %299 : vector<8x32xf32>
    %301 = math.exp %300 : vector<8x32xf32>
    %cst_104 = arith.constant 1.000000e+00 : f32
    %302 = vector.broadcast %cst_104 : f32 to vector<8x32xf32>
    %303 = arith.addf %302, %301 : vector<8x32xf32>
    %304 = arith.divf %302, %303 : vector<8x32xf32>
    %305 = arith.mulf %296, %263 : vector<8x32xf32>
    %306 = arith.mulf %290, %298 : vector<8x32xf32>
    %307 = arith.addf %305, %306 : vector<8x32xf32>
    %308 = math.tanh %307 : vector<8x32xf32>
    %309 = arith.mulf %304, %308 : vector<8x32xf32>
    %310 = arith.index_cast %c5_i32 : i32 to index
    %c0_105 = arith.constant 0 : index
    %c0_106 = arith.constant 0 : index
    %311 = vector.load %arg12[%310, %c0_105, %c0_106] : memref<8x8x32xf32, #tpu.memory_space<vmem>>, vector<1x8x32xf32>
    %312 = vector.shape_cast %311 : vector<1x8x32xf32> to vector<8x32xf32>
    %313 = vector.shape_cast %309 : vector<8x32xf32> to vector<1x8x32xf32>
    tpu.vector_store %arg12[%310, %c0_105, %c0_106], %313 {strides = array<i32>} : memref<8x8x32xf32, #tpu.memory_space<vmem>>, vector<1x8x32xf32>,
    %c7_i32_107 = arith.constant 7 : i32
    %314 = arith.subi %c7_i32_107, %c5_i32 : i32
    %315 = arith.index_cast %314 : i32 to index
    %c0_108 = arith.constant 0 : index
    %c0_109 = arith.constant 0 : index
    %316 = vector.load %arg13[%315, %c0_108, %c0_109] : memref<8x8x32xf32, #tpu.memory_space<vmem>>, vector<1x8x32xf32>
    %317 = vector.shape_cast %316 : vector<1x8x32xf32> to vector<8x32xf32>
    %318 = vector.shape_cast %309 : vector<8x32xf32> to vector<1x8x32xf32>
    tpu.vector_store %arg13[%315, %c0_108, %c0_109], %318 {strides = array<i32>} : memref<8x8x32xf32, #tpu.memory_space<vmem>>, vector<1x8x32xf32>,
    %c6_i32 = arith.constant 6 : i32
    %319 = arith.index_cast %c6_i32 : i32 to index
    %c0_110 = arith.constant 0 : index
    %c0_111 = arith.constant 0 : index
    %320 = vector.load %arg11[%319, %c0_110, %c0_111] : memref<8x8x128xf32, #tpu.memory_space<vmem>>, vector<1x8x128xf32>
    %321 = vector.shape_cast %320 : vector<1x8x128xf32> to vector<8x128xf32>
    %c7_i32_112 = arith.constant 7 : i32
    %322 = arith.subi %c7_i32_112, %c6_i32 : i32
    %323 = arith.index_cast %322 : i32 to index
    %c0_113 = arith.constant 0 : index
    %c0_114 = arith.constant 0 : index
    %324 = vector.load %arg11[%323, %c0_113, %c0_114] : memref<8x8x128xf32, #tpu.memory_space<vmem>>, vector<1x8x128xf32>
    %325 = vector.shape_cast %324 : vector<1x8x128xf32> to vector<8x128xf32>
    %326 = arith.select %53, %321, %325 : vector<8x128xi1>, vector<8x128xf32>
    %cst_115 = arith.constant dense<0.000000e+00> : vector<8x128xf32>
    %327 = tpu.matmul %309, %34, %cst_115 {dimension_numbers = #tpu.dot_dimension_numbers<[1], [0], [0], [1], [0, 0, 1, 1], [], []>} : vector<8x32xf32>, vector<32x128xf32>, vector<8x128xf32> -> vector<8x128xf32>
    %328 = arith.addf %326, %327 : vector<8x128xf32>
    %329 = vector.extract_strided_slice %328 {offsets = [0, 0], sizes = [8, 32], strides = [1, 1]} : vector<8x128xf32> to vector<8x32xf32>
    %330 = arith.negf %329 : vector<8x32xf32>
    %331 = math.exp %330 : vector<8x32xf32>
    %cst_116 = arith.constant 1.000000e+00 : f32
    %332 = vector.broadcast %cst_116 : f32 to vector<8x32xf32>
    %333 = arith.addf %332, %331 : vector<8x32xf32>
    %334 = arith.divf %332, %333 : vector<8x32xf32>
    %335 = vector.extract_strided_slice %328 {offsets = [0, 32], sizes = [8, 32], strides = [1, 1]} : vector<8x128xf32> to vector<8x32xf32>
    %336 = arith.negf %335 : vector<8x32xf32>
    %337 = math.exp %336 : vector<8x32xf32>
    %cst_117 = arith.constant 1.000000e+00 : f32
    %338 = vector.broadcast %cst_117 : f32 to vector<8x32xf32>
    %339 = arith.addf %338, %337 : vector<8x32xf32>
    %340 = arith.divf %338, %339 : vector<8x32xf32>
    %341 = vector.extract_strided_slice %328 {offsets = [0, 64], sizes = [8, 32], strides = [1, 1]} : vector<8x128xf32> to vector<8x32xf32>
    %342 = math.tanh %341 : vector<8x32xf32>
    %343 = vector.extract_strided_slice %328 {offsets = [0, 96], sizes = [8, 32], strides = [1, 1]} : vector<8x128xf32> to vector<8x32xf32>
    %344 = arith.negf %343 : vector<8x32xf32>
    %345 = math.exp %344 : vector<8x32xf32>
    %cst_118 = arith.constant 1.000000e+00 : f32
    %346 = vector.broadcast %cst_118 : f32 to vector<8x32xf32>
    %347 = arith.addf %346, %345 : vector<8x32xf32>
    %348 = arith.divf %346, %347 : vector<8x32xf32>
    %349 = arith.mulf %340, %307 : vector<8x32xf32>
    %350 = arith.mulf %334, %342 : vector<8x32xf32>
    %351 = arith.addf %349, %350 : vector<8x32xf32>
    %352 = math.tanh %351 : vector<8x32xf32>
    %353 = arith.mulf %348, %352 : vector<8x32xf32>
    %354 = arith.index_cast %c6_i32 : i32 to index
    %c0_119 = arith.constant 0 : index
    %c0_120 = arith.constant 0 : index
    %355 = vector.load %arg12[%354, %c0_119, %c0_120] : memref<8x8x32xf32, #tpu.memory_space<vmem>>, vector<1x8x32xf32>
    %356 = vector.shape_cast %355 : vector<1x8x32xf32> to vector<8x32xf32>
    %357 = vector.shape_cast %353 : vector<8x32xf32> to vector<1x8x32xf32>
    tpu.vector_store %arg12[%354, %c0_119, %c0_120], %357 {strides = array<i32>} : memref<8x8x32xf32, #tpu.memory_space<vmem>>, vector<1x8x32xf32>,
    %c7_i32_121 = arith.constant 7 : i32
    %358 = arith.subi %c7_i32_121, %c6_i32 : i32
    %359 = arith.index_cast %358 : i32 to index
    %c0_122 = arith.constant 0 : index
    %c0_123 = arith.constant 0 : index
    %360 = vector.load %arg13[%359, %c0_122, %c0_123] : memref<8x8x32xf32, #tpu.memory_space<vmem>>, vector<1x8x32xf32>
    %361 = vector.shape_cast %360 : vector<1x8x32xf32> to vector<8x32xf32>
    %362 = vector.shape_cast %353 : vector<8x32xf32> to vector<1x8x32xf32>
    tpu.vector_store %arg13[%359, %c0_122, %c0_123], %362 {strides = array<i32>} : memref<8x8x32xf32, #tpu.memory_space<vmem>>, vector<1x8x32xf32>,
    %c7_i32_124 = arith.constant 7 : i32
    %363 = arith.index_cast %c7_i32_124 : i32 to index
    %c0_125 = arith.constant 0 : index
    %c0_126 = arith.constant 0 : index
    %364 = vector.load %arg11[%363, %c0_125, %c0_126] : memref<8x8x128xf32, #tpu.memory_space<vmem>>, vector<1x8x128xf32>
    %365 = vector.shape_cast %364 : vector<1x8x128xf32> to vector<8x128xf32>
    %c7_i32_127 = arith.constant 7 : i32
    %366 = arith.subi %c7_i32_127, %c7_i32_124 : i32
    %367 = arith.index_cast %366 : i32 to index
    %c0_128 = arith.constant 0 : index
    %c0_129 = arith.constant 0 : index
    %368 = vector.load %arg11[%367, %c0_128, %c0_129] : memref<8x8x128xf32, #tpu.memory_space<vmem>>, vector<1x8x128xf32>
    %369 = vector.shape_cast %368 : vector<1x8x128xf32> to vector<8x128xf32>
    %370 = arith.select %53, %365, %369 : vector<8x128xi1>, vector<8x128xf32>
    %cst_130 = arith.constant dense<0.000000e+00> : vector<8x128xf32>
    %371 = tpu.matmul %353, %34, %cst_130 {dimension_numbers = #tpu.dot_dimension_numbers<[1], [0], [0], [1], [0, 0, 1, 1], [], []>} : vector<8x32xf32>, vector<32x128xf32>, vector<8x128xf32> -> vector<8x128xf32>
    %372 = arith.addf %370, %371 : vector<8x128xf32>
    %373 = vector.extract_strided_slice %372 {offsets = [0, 0], sizes = [8, 32], strides = [1, 1]} : vector<8x128xf32> to vector<8x32xf32>
    %374 = arith.negf %373 : vector<8x32xf32>
    %375 = math.exp %374 : vector<8x32xf32>
    %cst_131 = arith.constant 1.000000e+00 : f32
    %376 = vector.broadcast %cst_131 : f32 to vector<8x32xf32>
    %377 = arith.addf %376, %375 : vector<8x32xf32>
    %378 = arith.divf %376, %377 : vector<8x32xf32>
    %379 = vector.extract_strided_slice %372 {offsets = [0, 32], sizes = [8, 32], strides = [1, 1]} : vector<8x128xf32> to vector<8x32xf32>
    %380 = arith.negf %379 : vector<8x32xf32>
    %381 = math.exp %380 : vector<8x32xf32>
    %cst_132 = arith.constant 1.000000e+00 : f32
    %382 = vector.broadcast %cst_132 : f32 to vector<8x32xf32>
    %383 = arith.addf %382, %381 : vector<8x32xf32>
    %384 = arith.divf %382, %383 : vector<8x32xf32>
    %385 = vector.extract_strided_slice %372 {offsets = [0, 64], sizes = [8, 32], strides = [1, 1]} : vector<8x128xf32> to vector<8x32xf32>
    %386 = math.tanh %385 : vector<8x32xf32>
    %387 = vector.extract_strided_slice %372 {offsets = [0, 96], sizes = [8, 32], strides = [1, 1]} : vector<8x128xf32> to vector<8x32xf32>
    %388 = arith.negf %387 : vector<8x32xf32>
    %389 = math.exp %388 : vector<8x32xf32>
    %cst_133 = arith.constant 1.000000e+00 : f32
    %390 = vector.broadcast %cst_133 : f32 to vector<8x32xf32>
    %391 = arith.addf %390, %389 : vector<8x32xf32>
    %392 = arith.divf %390, %391 : vector<8x32xf32>
    %393 = arith.mulf %384, %351 : vector<8x32xf32>
    %394 = arith.mulf %378, %386 : vector<8x32xf32>
    %395 = arith.addf %393, %394 : vector<8x32xf32>
    %396 = math.tanh %395 : vector<8x32xf32>
    %397 = arith.mulf %392, %396 : vector<8x32xf32>
    %398 = arith.index_cast %c7_i32_124 : i32 to index
    %c0_134 = arith.constant 0 : index
    %c0_135 = arith.constant 0 : index
    %399 = vector.load %arg12[%398, %c0_134, %c0_135] : memref<8x8x32xf32, #tpu.memory_space<vmem>>, vector<1x8x32xf32>
    %400 = vector.shape_cast %399 : vector<1x8x32xf32> to vector<8x32xf32>
    %401 = vector.shape_cast %397 : vector<8x32xf32> to vector<1x8x32xf32>
    tpu.vector_store %arg12[%398, %c0_134, %c0_135], %401 {strides = array<i32>} : memref<8x8x32xf32, #tpu.memory_space<vmem>>, vector<1x8x32xf32>,
    %c7_i32_136 = arith.constant 7 : i32
    %402 = arith.subi %c7_i32_136, %c7_i32_124 : i32
    %403 = arith.index_cast %402 : i32 to index
    %c0_137 = arith.constant 0 : index
    %c0_138 = arith.constant 0 : index
    %404 = vector.load %arg13[%403, %c0_137, %c0_138] : memref<8x8x32xf32, #tpu.memory_space<vmem>>, vector<1x8x32xf32>
    %405 = vector.shape_cast %404 : vector<1x8x32xf32> to vector<8x32xf32>
    %406 = vector.shape_cast %397 : vector<8x32xf32> to vector<1x8x32xf32>
    tpu.vector_store %arg13[%403, %c0_137, %c0_138], %406 {strides = array<i32>} : memref<8x8x32xf32, #tpu.memory_space<vmem>>, vector<1x8x32xf32>,
    %c8_i32 = arith.constant 8 : i32
    %407 = tpu.iota {dimensions = array<i32: 2>} : vector<8x8x32xi32>
    %c16_i32_139 = arith.constant 16 : i32
    %408 = vector.broadcast %c16_i32_139 : i32 to vector<8x8x32xi32>
    %409 = arith.cmpi slt, %407, %408 : vector<8x8x32xi32>
    %c0_140 = arith.constant 0 : index
    %c0_141 = arith.constant 0 : index
    %c0_142 = arith.constant 0 : index
    %410 = vector.load %arg12[%c0_140, %c0_141, %c0_142] : memref<8x8x32xf32, #tpu.memory_space<vmem>>, vector<8x8x32xf32>
    %c0_143 = arith.constant 0 : index
    %c0_144 = arith.constant 0 : index
    %c0_145 = arith.constant 0 : index
    %411 = vector.load %arg13[%c0_143, %c0_144, %c0_145] : memref<8x8x32xf32, #tpu.memory_space<vmem>>, vector<8x8x32xf32>
    %412 = arith.select %409, %410, %411 : vector<8x8x32xi1>, vector<8x8x32xf32>
    %413 = vector.shape_cast %412 : vector<8x8x32xf32> to vector<64x32xf32>
    %c0_146 = arith.constant 0 : index
    %c0_147 = arith.constant 0 : index
    %414 = vector.load %arg8[%c0_146, %c0_147] : memref<32x16xf32, #tpu.memory_space<vmem>>, vector<32x16xf32>
    %cst_148 = arith.constant dense<0.000000e+00> : vector<64x16xf32>
    %415 = tpu.matmul %413, %414, %cst_148 {dimension_numbers = #tpu.dot_dimension_numbers<[1], [0], [0], [1], [0, 0, 1, 1], [], []>} : vector<64x32xf32>, vector<32x16xf32>, vector<64x16xf32> -> vector<64x16xf32>
    %c0_149 = arith.constant 0 : index
    %c0_150 = arith.constant 0 : index
    %416 = vector.load %arg9[%c0_149, %c0_150] : memref<1x16xf32, #tpu.memory_space<vmem>>, vector<1x16xf32>
    %417 = vector.broadcast %416 : vector<1x16xf32> to vector<64x16xf32>
    %418 = arith.addf %415, %417 : vector<64x16xf32>
    %419 = vector.shape_cast %418 : vector<64x16xf32> to vector<8x8x16xf32>
    %420 = arith.addf %419, %1 : vector<8x8x16xf32>
    %421 = tpu.transpose %420, [1, 0, 2] : vector<8x8x16xf32> -> vector<8x8x16xf32>
    %c0_151 = arith.constant 0 : index
    %c0_152 = arith.constant 0 : index
    %c0_153 = arith.constant 0 : index
    %c0_154 = arith.constant 0 : index
    %422 = vector.load %arg10[%c0_151, %c0_152, %c0_153, %c0_154] : memref<1x8x8x16xf32, #tpu.memory_space<vmem>>, vector<1x8x8x16xf32>
    %423 = vector.shape_cast %422 : vector<1x8x8x16xf32> to vector<8x8x16xf32>
    %424 = vector.shape_cast %421 : vector<8x8x16xf32> to vector<1x8x8x16xf32>
    tpu.vector_store %arg10[%c0_151, %c0_152, %c0_153, %c0_154], %424 {strides = array<i32>} : memref<1x8x8x16xf32, #tpu.memory_space<vmem>>, vector<1x8x8x16xf32>,
    return
  }
  func.func @transform_0(%arg0: i32, %arg1: i32) -> (i32, i32, i32, i32) {
    %c0_i32 = arith.constant 0 : i32
    %c0_i32_0 = arith.constant 0 : i32
    %c0_i32_1 = arith.constant 0 : i32
    return %arg0, %c0_i32, %arg1, %c0_i32_0 : i32, i32, i32, i32
  }
  func.func @transform_1(%arg0: i32, %arg1: i32) -> (i32, i32) {
    %c0_i32 = arith.constant 0 : i32
    %c0_i32_0 = arith.constant 0 : i32
    %c0_i32_1 = arith.constant 0 : i32
    return %c0_i32, %c0_i32_0 : i32, i32
  }
  func.func @transform_2(%arg0: i32, %arg1: i32) -> (i32, i32) {
    %c0_i32 = arith.constant 0 : i32
    %c0_i32_0 = arith.constant 0 : i32
    %c0_i32_1 = arith.constant 0 : i32
    return %c0_i32, %c0_i32_0 : i32, i32
  }
  func.func @transform_3(%arg0: i32, %arg1: i32) -> (i32, i32) {
    %c0_i32 = arith.constant 0 : i32
    %c0_i32_0 = arith.constant 0 : i32
    %c0_i32_1 = arith.constant 0 : i32
    return %c0_i32, %c0_i32_0 : i32, i32
  }
  func.func @transform_4(%arg0: i32, %arg1: i32) -> (i32, i32) {
    %c0_i32 = arith.constant 0 : i32
    %c0_i32_0 = arith.constant 0 : i32
    %c0_i32_1 = arith.constant 0 : i32
    return %c0_i32, %c0_i32_0 : i32, i32
  }
  func.func @transform_5(%arg0: i32, %arg1: i32) -> (i32, i32) {
    %c0_i32 = arith.constant 0 : i32
    %c0_i32_0 = arith.constant 0 : i32
    %c0_i32_1 = arith.constant 0 : i32
    return %c0_i32, %c0_i32_0 : i32, i32
  }
  func.func @transform_6(%arg0: i32, %arg1: i32) -> (i32, i32) {
    %c0_i32 = arith.constant 0 : i32
    %c0_i32_0 = arith.constant 0 : i32
    %c0_i32_1 = arith.constant 0 : i32
    return %c0_i32, %c0_i32_0 : i32, i32
  }
  func.func @transform_7(%arg0: i32, %arg1: i32) -> (i32, i32) {
    %c0_i32 = arith.constant 0 : i32
    %c0_i32_0 = arith.constant 0 : i32
    %c0_i32_1 = arith.constant 0 : i32
    return %c0_i32, %c0_i32_0 : i32, i32
  }
  func.func @transform_8(%arg0: i32, %arg1: i32) -> (i32, i32, i32, i32) {
    %c0_i32 = arith.constant 0 : i32
    %c0_i32_0 = arith.constant 0 : i32
    %c0_i32_1 = arith.constant 0 : i32
    return %arg0, %arg1, %c0_i32, %c0_i32_0 : i32, i32, i32, i32
  }
}

</mosaic_0001>

<bundles_post_ra>
// kernel: band_sequence_forward.4
= control target key start
LH: loop header
LB: loop body
LE: loop exit
PB: predicated region body
PF: predicated region fallthrough
CT: control target
= control target key end

     0   :  { %s2292_s27 = smov 0   ;;  %s2294_s28 = smov 0   ;;  %s2704_s0 = inlined_call_operand.vmem [shape: f32[4,8,8,16], index: 0, kind: input, shape index: {}]   ;;  %s2705_s1 = inlined_call_operand.vmem [shape: f32[1,16], index: 1, kind: input, shape index: {}]   ;;  %s2706_s2 = inlined_call_operand.vmem [shape: f32[1,16], index: 2, kind: input, shape index: {}]   ;;  %s2707_s3 = inlined_call_operand.vmem [shape: f32[16,128], index: 3, kind: input, shape index: {}]   ;;  %s2708_s4 = inlined_call_operand.vmem [shape: f32[32,128], index: 4, kind: input, shape index: {}]   ;;  %s2709_s5 = inlined_call_operand.vmem [shape: f32[1,128], index: 5, kind: input, shape index: {}]   ;;  %s2710_s6 = inlined_call_operand.vmem [shape: f32[32,16], index: 6, kind: input, shape index: {}]   ;;  %s2711_s7 = inlined_call_operand.vmem [shape: f32[1,16], index: 7, kind: input, shape index: {}]   ;;  %s2712_s8 = inlined_call_operand.vmem [shape: f32[4,8,8,16], index: 8, kind: output, shape index: {}]  }
   0x1   :  { %s2296_s29 = smov 0  }
   0x2 LB: > { %s30_s30 = sadd.s32 1, %s2235_s28  ;;  %p1885_p0 = scmp.ge.s32.totalorder %s2239_s29, 1  ;;  %s2239_s29 = sphi %s2296_s29, %s18_s29   ;;  %s2235_s28 = sphi %s2294_s28, %s2716_s28   ;;  %s2231_s27 = sphi %s2292_s27, %s2715_s27  }
   0x3   : > { %p32_p1 = scmp.ge.s32.totalorder %s30_s30, 4  ;;  %p281_p2 = scmp.lt.s32.totalorder %s2239_s29, 5 }
   0x5   : > { %s2718_s30 = smov (%p32_p1, %s30_s30), 0  ;;  %p282_p3 = pnand %p1885_p0, %p281_p2 }
   0x6   : > { %p322_p4 = scmp.lt.s32.totalorder (!%p282_p3), %s2231_s27, 3  ;;  %s2243_s15 = smov (!%p282_p3), 64  }
   0x7   : > { %285 = sbr.rel (%p282_p3) target bundleno = 6109 (0x17dd), region = 52  ;;  %s2244_s16 = smov (!%p282_p3), 32  }
   0xc   : > { %s2720_s27 = smov (!%p322_p4, %s2231_s27), 3  ;;  %vm348_vm0 = vcmask 130048   ;;  %v442_v56 = vld [vmem:[%s2707_s3 + $0x8] sm:$0xff]  ;;  %v441_v57 = vld [vmem:[%s2707_s3] sm:$0xff]  ;;  %v2241_v58 = vmov 0.0   ;;  %vm2242_vm1 = vmmov 0  }
   0xd   : > { %s1927_s9 = sshll.u32 %s2720_s27, 6  ;;  %2115 = vmatprep.subr.mxu1 %v442_v56  ;;  %1991 = vmatprep.subr.mxu0 %v442_v56  ;;  %v1890_v63 = vld [vmem:[%s2705_s1] ss:$0 sm:$0xff]  ;;  %vm610_vm3 = vcmask 261120  }
   0xe   : > { %s2318_s12 = scalar_lea.vmem %s2704_s0, %s1927_s9  ;;  %2117 = vmatpush3.msra.mxu1 %v442_v56  ;;  %1992 = vmatpush3.msra.mxu0 %v442_v56  ;;  %s338_s11 = scalar_lea.vmem %s2712_s8, %s1927_s9 }
   0xf   : > { %v2321_v0 = vld [vmem:[%s2318_s12] sm:$0xff]  ;;  %v2324_v1 = vld [vmem:[%s2318_s12 + $0x8] sm:$0xff]  ;;  %v2327_v2 = vld [vmem:[%s2318_s12 + $0x10] sm:$0xff]  ;;  %2116 = vmatprep.subr.mxu1 %v441_v57  ;;  %1993 = vmatprep.subr.mxu0 %v441_v57 }
  0x10   : > { %v2330_v3 = vld [vmem:[%s2318_s12 + $0x18] sm:$0xff]  ;;  %v349_v4 = vsel %vm348_vm0, %v2321_v0, 0.0  ;;  %v350_v5 = vsel %vm348_vm0, %v2324_v1, 0.0  ;;  %v352_v6 = vsel %vm348_vm0, %v2327_v2, 0.0  ;;  %v344_v7 = vld [vmem:[%s2318_s12 + $0x20] sm:$0xff]  ;;  %v2342_v10 = vld [vmem:[%s2318_s12 + $0x28] sm:$0xff]  ;;  %2118 = vmatpush3.msra.mxu1 %v441_v57  ;;  %1994 = vmatpush3.msra.mxu0 %v441_v57 }
  0x11   : > { %v351_v8 = vadd.f32 %v350_v5, %v349_v4  ;;  %v354_v9 = vsel %vm348_vm0, %v2330_v3, 0.0  ;;  %v356_v12 = vsel %vm348_vm0, %v344_v7, 0.0  ;;  %v346_v13 = vld [vmem:[%s2318_s12 + $0x30] sm:$0xff]  ;;  %v358_v15 = vsel %vm348_vm0, %v2342_v10, 0.0  ;;  %v2349_v16 = vld [vmem:[%s2318_s12 + $0x38] sm:$0xff]  ;;  %2007 = vmatprep.subr.mxu1 %v2241_v58  ;;  %2029 = vmatprep.subr.mxu0 %v2241_v58 }
  0x12   : > { %v360_v18 = vsel %vm348_vm0, %v346_v13, 0.0  ;;  %v362_v20 = vsel %vm348_vm0, %v2349_v16, 0.0 }
  0x13   : > { %v353_v11 = vadd.f32 %v352_v6, %v351_v8  ;;  %v1891_v8 = vld [vmem:[%s2706_s2] ss:$0 sm:$0xff] }
  0x15   : > { %v355_v14 = vadd.f32 %v354_v9, %v353_v11 }
  0x17   : > { %v357_v17 = vadd.f32 %v356_v12, %v355_v14 }
  0x19   : > { %v359_v19 = vadd.f32 %v358_v15, %v357_v17 }
  0x1b   : > { %v361_v21 = vadd.f32 %v360_v18, %v359_v19 }
  0x1d   : > { %v363_v22 = vadd.f32 %v362_v20, %v361_v21 }
  0x1f   : > { %364 = vadd.xlane.f32.xlu0 %v363_v22 }
  0xa8   : > { %v365_v23 = vpop.xlane.xlu0 %364 }
  0xa9   : > { %v366_v24 = vmul.f32 0.0078125, %v365_v23 }
  0xab   : > { %v367_v25 = vsub.f32 %v2321_v0, %v366_v24  ;;  %v368_v26 = vsub.f32 %v2324_v1, %v366_v24  ;;  %v369_v27 = vsub.f32 %v2327_v2, %v366_v24  ;;  %v370_v28 = vsub.f32 %v2330_v3, %v366_v24 }
  0xac   : > { %v371_v29 = vsub.f32 %v344_v7, %v366_v24  ;;  %v372_v33 = vsub.f32 %v2342_v10, %v366_v24  ;;  %v373_v38 = vsub.f32 %v346_v13, %v366_v24  ;;  %v374_v42 = vsub.f32 %v2349_v16, %v366_v24 }
  0xad   : > { %v375_v30 = vmul.f32 %v367_v25, %v367_v25  ;;  %v376_v31 = vmul.f32 %v368_v26, %v368_v26  ;;  %v377_v32 = vmul.f32 %v369_v27, %v369_v27  ;;  %v378_v34 = vmul.f32 %v370_v28, %v370_v28 }
  0xae   : > { %v379_v39 = vmul.f32 %v371_v29, %v371_v29  ;;  %v380_v43 = vmul.f32 %v372_v33, %v372_v33  ;;  %v381_v46 = vmul.f32 %v373_v38, %v373_v38  ;;  %v382_v49 = vmul.f32 %v374_v42, %v374_v42 }
  0xaf   : > { %v383_v35 = vsel %vm348_vm0, %v375_v30, 0.0  ;;  %v384_v36 = vsel %vm348_vm0, %v376_v31, 0.0  ;;  %v386_v40 = vsel %vm348_vm0, %v377_v32, 0.0  ;;  %v388_v44 = vsel %vm348_vm0, %v378_v34, 0.0  ;;  %v2394_v30 = vld [vmem:[%s2708_s4 + $0x10] sm:$0xff]  ;;  %v2413_v34 = vld [vmem:[%s2708_s4] sm:$0xff] }
  0xb0   : > { %v385_v37 = vadd.f32 %v384_v36, %v383_v35  ;;  %v390_v47 = vsel %vm348_vm0, %v379_v39, 0.0  ;;  %v392_v50 = vsel %vm348_vm0, %v380_v43, 0.0  ;;  %v394_v52 = vsel %vm348_vm0, %v381_v46, 0.0 }
  0xb1   : > { %v396_v54 = vsel %vm348_vm0, %v382_v49, 0.0  ;;  %v591_v35 = vlaneseq }
  0xb2   : > { %v387_v41 = vadd.f32 %v386_v40, %v385_v37  ;;  %v1892_v37 = vld [vmem:[%s2709_s5] ss:$0 sm:$0xff] }
  0xb3   : > { %v2442_v36 = vand.u32 127, %v591_v35 }
  0xb4   : > { %v389_v45 = vadd.f32 %v388_v44, %v387_v41 }
  0xb5   : > { %v597_v40 = vand.u32 31, %v2442_v36  ;;  %vm1477_vm4 = vcmp.lt.s32.totalorder %v2442_v36, 16 }
  0xb6   : > { %v391_v48 = vadd.f32 %v390_v47, %v389_v45 }
  0xb7   : > { %vm2454_vm2 = vcmp.lt.s32.totalorder %v597_v40, 16 }
  0xb8   : > { %v393_v51 = vadd.f32 %v392_v50, %v391_v48 }
  0xba   : > { %v395_v53 = vadd.f32 %v394_v52, %v393_v51 }
  0xbc   : > { %v397_v55 = vadd.f32 %v396_v54, %v395_v53 }
  0xbe   : > { %398 = vadd.xlane.f32.xlu0 %v397_v55 }
 0x147   : > { %v399_v59 = vpop.xlane.xlu0 %398 }
 0x148   : > { %v400_v60 = vmul.f32 0.0078125, %v399_v59 }
 0x14a   : > { %v401_v61 = vadd.f32 1e-05, %v400_v60 }
 0x14c   : > { %2149 = vrsqrt.f32 %v401_v61 }
 0x159   : > { %v2150_v62 = vpop.eup %2149 }
 0x15a   : > { %v403_v4 = vmul.f32 %v2150_v62, %v367_v25  ;;  %v407_v5 = vmul.f32 %v2150_v62, %v371_v29  ;;  %v404_v6 = vmul.f32 %v2150_v62, %v368_v26  ;;  %v408_v7 = vmul.f32 %v2150_v62, %v372_v33  ;;  %v2385_v25 = vld [vmem:[%s2708_s4 + $0x18] sm:$0xff]  ;;  %v2404_v33 = vld [vmem:[%s2708_s4 + $0x8] sm:$0xff] }
 0x15b   : > { %v405_v9 = vmul.f32 %v2150_v62, %v369_v27  ;;  %v409_v11 = vmul.f32 %v2150_v62, %v373_v38  ;;  %v406_v12 = vmul.f32 %v2150_v62, %v370_v28  ;;  %v410_v13 = vmul.f32 %v2150_v62, %v374_v42 }
 0x15c   : > { %v418_v14 = vmul.f32 %v1890_v63, %v403_v4  ;;  %v422_v15 = vmul.f32 %v1890_v63, %v407_v5  ;;  %v419_v17 = vmul.f32 %v1890_v63, %v404_v6  ;;  %v423_v18 = vmul.f32 %v1890_v63, %v408_v7 }
 0x15d   : > { %v420_v19 = vmul.f32 %v1890_v63, %v405_v9  ;;  %v424_v20 = vmul.f32 %v1890_v63, %v409_v11  ;;  %v421_v26 = vmul.f32 %v1890_v63, %v406_v12  ;;  %v425_v28 = vmul.f32 %v1890_v63, %v410_v13 }
 0x15e   : > { %v433_v21 = vadd.f32 %v1891_v8, %v418_v14  ;;  %v437_v22 = vadd.f32 %v1891_v8, %v422_v15  ;;  %v434_v23 = vadd.f32 %v1891_v8, %v419_v17  ;;  %v438_v24 = vadd.f32 %v1891_v8, %v423_v18 }
 0x15f   : > { %v435_v27 = vadd.f32 %v1891_v8, %v420_v19  ;;  %v439_v29 = vadd.f32 %v1891_v8, %v424_v20  ;;  %v436_v31 = vadd.f32 %v1891_v8, %v421_v26  ;;  %v440_v32 = vadd.f32 %v1891_v8, %v425_v28 }
 0x160   : > { %1995 = vmatprep.mubr.msk.f32.mxu0 %vm348_vm0, %v433_v21  ;;  %2001 = vmatprep.mubr.msk.f32.mxu1 %vm348_vm0, %v437_v22 }
 0x161   : > { %1996 = vmatmul.mubr.msk.f32.vlgmr.msra.gmra.mxu0 %vm348_vm0, %v434_v23  ;;  %2002 = vmatmul.mubr.msk.f32.vlgmr.msra.gmra.mxu1 %vm348_vm0, %v438_v24 }
 0x162   : > { %2008 = vmatpush3.msra.mxu1 %v2385_v25  ;;  %1998 = vmatprep.mubr.msk.f32.mxu0 %vm348_vm0, %v435_v27 }
 0x163   : > { %2004 = vmatprep.mubr.msk.f32.mxu1 %vm348_vm0, %v439_v29  ;;  %2009 = vmatprep.subr.mxu1 %v2241_v58 }
 0x164   : > { %2010 = vmatpush3.msra.mxu1 %v2394_v30  ;;  %2030 = vmatpush3.msra.mxu0 %v2385_v25 }
 0x165   : > { %2011 = vmatprep.subr.mxu1 %v2241_v58  ;;  %1999 = vmatmul.mubr.msk.f32.gmra.mxu0 %vm348_vm0, %v436_v31 }
 0x166   : > { %2005 = vmatmul.mubr.msk.f32.gmra.mxu1 %vm348_vm0, %v440_v32  ;;  %2031 = vmatprep.subr.mxu0 %v2241_v58 }
 0x167   : > { %2012 = vmatpush3.msra.mxu1 %v2404_v33  ;;  %2015 = vmatprep.mubr.msk.f32.mxu1 %vm2242_vm1, %v2241_v58 }
 0x168   : > { %2013 = vmatprep.subr.mxu1 %v2241_v58  ;;  %2032 = vmatpush3.msra.mxu0 %v2394_v30 }
 0x169   : > { %2014 = vmatpush3.msra.mxu1 %v2413_v34  ;;  %2033 = vmatprep.subr.mxu0 %v2241_v58 }
 0x16a   : > { %2016 = vmatmul.mubr.f32.vlgmr.msra.gmra.mxu1 %v2241_v58  ;;  %2018 = vmatprep.subr.mxu1 %v2241_v58 }
 0x16b   : > { %2019 = vmatpush3.msra.mxu1 %v2385_v25  ;;  %2026 = vmatprep.mubr.msk.f32.mxu1 %vm2242_vm1, %v2241_v58 }
 0x16c   : > { %2020 = vmatprep.subr.mxu1 %v2241_v58  ;;  %2034 = vmatpush3.msra.mxu0 %v2404_v33 }
 0x16d   : > { %2021 = vmatpush3.msra.mxu1 %v2394_v30  ;;  %2035 = vmatprep.subr.mxu0 %v2241_v58 }
 0x16e   : > { %2022 = vmatprep.subr.mxu1 %v2241_v58  ;;  %2036 = vmatpush3.msra.mxu0 %v2413_v34 }
 0x16f   : > { %2023 = vmatpush3.msra.mxu1 %v2404_v33  ;;  %2037 = vmatprep.mubr.msk.f32.mxu0 %vm2242_vm1, %v2241_v58 }
 0x170   : > { %2024 = vmatprep.subr.mxu1 %v2241_v58  ;;  %2051 = vmatprep.subr.mxu0 %v2241_v58 }
 0x171   : > { %2025 = vmatpush3.msra.mxu1 %v2413_v34 }
 0x172   : > { %2040 = vmatprep.subr.mxu1 %v2241_v58 }
 0x221   : > { %v1997_v38 = vpop.f32.mrf.mxu0  ;;  %v2003_v39 = vpop.f32.mrf.mxu1 }
 0x222   : > { %v2448_v41 = vadd.f32 %v1997_v38, %v1892_v37  ;;  %v2450_v42 = vadd.f32 %v2003_v39, %v1892_v37 }
 0x223   : > { %v540_v43 = vpop.f32.mrf.mxu0  ;;  %v560_v44 = vpop.f32.mrf.mxu1 }
 0x224   : > { %v2452_v45 = vadd.f32 %v1892_v37, %v560_v44  ;;  %v2460_v50 = vadd.f32 %v1892_v37, %v540_v43 }
 0x225   : > { %v2000_v46 = vpop.f32.mrf.mxu0 }
 0x226   : > { %v2458_v48 = vadd.f32 %v2000_v46, %v1892_v37  ;;  %v2006_v49 = vpop.f32.mrf.mxu1 }
 0x227   : > { %v2462_v51 = vadd.f32 %v2006_v49, %v1892_v37  ;;  %v550_v52 = vpop.f32.mrf.mxu0 }
 0x228   : > { %v2464_v53 = vadd.f32 %v1892_v37, %v550_v52  ;;  %v570_v54 = vpop.f32.mrf.mxu1  ;;  %v940_v55 = vsel %vm2454_vm2, %v2458_v48, %v2452_v45  ;;  %v1048_v56 = vsel %vm2454_vm2, %v2452_v45, %v2458_v48 }
 0x229   : > { %v2474_v57 = vadd.f32 %v1892_v37, %v570_v54  ;;  %v609_v59 = vsel %vm2454_vm2, %v2460_v50, %v2462_v51  ;;  %v1372_v60 = vsel %vm2454_vm2, %v2462_v51, %v2460_v50  ;;  %v1505_v51 = vld [vmem:[%s2710_s6 + $0x18] sm:$0xff] }
 0x22a   : > { %v680_v61 = vpop.f32.mrf.mxu1  ;;  %v830_v62 = vsel %vm2454_vm2, %v2464_v53, %v2450_v42  ;;  %v1156_v63 = vsel %vm2454_vm2, %v2450_v42, %v2464_v53 }
 0x22b   : > { %v684_v4 = vadd.f32 %v680_v61, %v609_v59  ;;  %v720_v5 = vsel %vm2454_vm2, %v2448_v41, %v2474_v57  ;;  %v1264_v6 = vsel %vm2454_vm2, %v2474_v57, %v2448_v41 }
 0x22c   : > { %v2017_v7 = vpop.f32.mrf.mxu1 }
 0x22d   : > { %2151 = vtanh.f32 %v684_v4  ;;  %v1901_v9 = vmul.f32 -1.442695, %v684_v4 }
 0x22f   : > { %2153 = vpow2.f32 %v1901_v9 }
 0x23a   : > { %v2152_v8 = vpop.eup %2151 }
 0x23b   : > { %694 = vrot.lane.b32.xlu1 %v2152_v8, %s2243_s15 }
 0x23c   : > { %v2154_v11 = vpop.eup %2153 }
 0x23d   : > { %v688_v12 = vadd.f32 1.0, %v2154_v11 }
 0x23f   : > { %2155 = vrcp.f32 %v688_v12 }
 0x24c   : > { %v2156_v13 = vpop.eup %2155 }
 0x24d   : > { %v692_v17 = vmul.f32 0.0, %v2156_v13 }
 0x2ad   : > { %v695_v14 = vpop.permute.xlu1 %694 }
 0x2ae   : > { %v697_v15 = vmul.f32 %v2156_v13, %v695_v14 }
 0x2b0   : > { %699 = vrot.lane.b32.xlu1 %v697_v15, %s2244_s16 }
 0x322   : > { %v700_v18 = vpop.permute.xlu1 %699 }
 0x323   : > { %v702_v19 = vadd.f32 %v700_v18, %v692_v17 }
 0x325   : > { %2157 = vtanh.f32 %v702_v19 }
 0x332   : > { %v2158_v20 = vpop.eup %2157 }
 0x333   : > { %705 = vrot.lane.b32.xlu0 %v2158_v20, %s2243_s15 }
 0x3a5   : > { %v706_v21 = vpop.permute.xlu0 %705 }
 0x3a6   : > { %v708_v22 = vmul.f32 %v2156_v13, %v706_v21 }
 0x3a8   : > { %710 = vrot.lane.b32.xlu1 %v708_v22, %s2244_s16 }
 0x41a   : > { %v711_v23 = vpop.permute.xlu1 %710 }
 0x41b   : > { %713 = vst.msk [vmem:[#allocation3] sm:$0xff] %vm610_vm3, %v711_v23  ;;  %715 = vst.msk [vmem:[#allocation4 + $0x38] sm:$0xff] %vm610_vm3, %v711_v23  ;;  %2027 = vmatmul.mubr.msk.f32.vlgmr.msra.gmra.mxu1 %vm610_vm3, %v711_v23 }
 0x41c   : > { %2041 = vmatpush3.msra.mxu1 %v2385_v25  ;;  %2048 = vmatprep.mubr.msk.f32.mxu1 %vm2242_vm1, %v2241_v58 }
 0x41d   : > { %2042 = vmatprep.subr.mxu1 %v2241_v58 }
 0x41e   : > { %2043 = vmatpush3.msra.mxu1 %v2394_v30 }
 0x41f   : > { %2044 = vmatprep.subr.mxu1 %v2241_v58 }
 0x420   : > { %2045 = vmatpush3.msra.mxu1 %v2404_v33 }
 0x421   : > { %2046 = vmatprep.subr.mxu1 %v2241_v58 }
 0x422   : > { %2047 = vmatpush3.msra.mxu1 %v2413_v34 }
 0x423   : > { %2062 = vmatprep.subr.mxu1 %v2241_v58 }
 0x4db   : > { %v789_v24 = vpop.f32.mrf.mxu1 }
 0x4dc   : > { %v793_v26 = vadd.f32 %v789_v24, %v720_v5 }
 0x4dd   : > { %v2028_v27 = vpop.f32.mrf.mxu1 }
 0x4de   : > { %2159 = vtanh.f32 %v793_v26  ;;  %v1903_v29 = vmul.f32 -1.442695, %v793_v26 }
 0x4e0   : > { %2161 = vpow2.f32 %v1903_v29 }
 0x4eb   : > { %v2160_v28 = vpop.eup %2159 }
 0x4ec   : > { %803 = vrot.lane.b32.xlu1 %v2160_v28, %s2243_s15 }
 0x4ed   : > { %v2162_v31 = vpop.eup %2161 }
 0x4ee   : > { %v797_v32 = vadd.f32 1.0, %v2162_v31 }
 0x4f0   : > { %2163 = vrcp.f32 %v797_v32 }
 0x4fd   : > { %v2164_v37 = vpop.eup %2163 }
 0x4fe   : > { %v801_v40 = vmul.f32 %v2164_v37, %v702_v19 }
 0x55e   : > { %v804_v38 = vpop.permute.xlu1 %803 }
 0x55f   : > { %v806_v39 = vmul.f32 %v2164_v37, %v804_v38 }
 0x561   : > { %808 = vrot.lane.b32.xlu1 %v806_v39, %s2244_s16 }
 0x5d3   : > { %v809_v43 = vpop.permute.xlu1 %808 }
 0x5d4   : > { %v811_v44 = vadd.f32 %v809_v43, %v801_v40 }
 0x5d6   : > { %2165 = vtanh.f32 %v811_v44 }
 0x5e3   : > { %v2166_v46 = vpop.eup %2165 }
 0x5e4   : > { %814 = vrot.lane.b32.xlu1 %v2166_v46, %s2243_s15 }
 0x656   : > { %v815_v49 = vpop.permute.xlu1 %814 }
 0x657   : > { %v817_v52 = vmul.f32 %v2164_v37, %v815_v49 }
 0x659   : > { %819 = vrot.lane.b32.xlu1 %v817_v52, %s2244_s16 }
 0x6cb   : > { %v820_v54 = vpop.permute.xlu1 %819 }
 0x6cc   : > { %823 = vst.msk [vmem:[#allocation3 + $0x8] sm:$0xff] %vm610_vm3, %v820_v54  ;;  %825 = vst.msk [vmem:[#allocation4 + $0x30] sm:$0xff] %vm610_vm3, %v820_v54  ;;  %2038 = vmatmul.mubr.msk.f32.vlgmr.msra.gmra.mxu0 %vm610_vm3, %v820_v54 }
 0x6cd   : > { %2052 = vmatpush3.msra.mxu0 %v2385_v25  ;;  %2059 = vmatprep.mubr.msk.f32.mxu0 %vm2242_vm1, %v2241_v58 }
 0x6ce   : > { %2053 = vmatprep.subr.mxu0 %v2241_v58 }
 0x6cf   : > { %2054 = vmatpush3.msra.mxu0 %v2394_v30 }
 0x6d0   : > { %2055 = vmatprep.subr.mxu0 %v2241_v58 }
 0x6d1   : > { %2056 = vmatpush3.msra.mxu0 %v2404_v33 }
 0x6d2   : > { %2057 = vmatprep.subr.mxu0 %v2241_v58 }
 0x6d3   : > { %2058 = vmatpush3.msra.mxu0 %v2413_v34 }
 0x6d4   : > { %2073 = vmatprep.subr.mxu0 %v2241_v58 }
 0x78c   : > { %v899_v59 = vpop.f32.mrf.mxu0 }
 0x78d   : > { %v903_v61 = vadd.f32 %v899_v59, %v830_v62 }
 0x78e   : > { %v2039_v4 = vpop.f32.mrf.mxu0 }
 0x78f   : > { %2167 = vtanh.f32 %v903_v61  ;;  %v1905_v7 = vmul.f32 -1.442695, %v903_v61 }
 0x791   : > { %2169 = vpow2.f32 %v1905_v7 }
 0x79c   : > { %v2168_v5 = vpop.eup %2167 }
 0x79d   : > { %913 = vrot.lane.b32.xlu1 %v2168_v5, %s2243_s15 }
 0x79e   : > { %v2170_v8 = vpop.eup %2169 }
 0x79f   : > { %v907_v9 = vadd.f32 1.0, %v2170_v8 }
 0x7a1   : > { %2171 = vrcp.f32 %v907_v9 }
 0x7ae   : > { %v2172_v11 = vpop.eup %2171 }
 0x7af   : > { %v911_v14 = vmul.f32 %v2172_v11, %v811_v44 }
 0x80f   : > { %v914_v12 = vpop.permute.xlu1 %913 }
 0x810   : > { %v916_v13 = vmul.f32 %v2172_v11, %v914_v12 }
 0x812   : > { %918 = vrot.lane.b32.xlu0 %v916_v13, %s2244_s16 }
 0x884   : > { %v919_v15 = vpop.permute.xlu0 %918 }
 0x885   : > { %v921_v17 = vadd.f32 %v919_v15, %v911_v14 }
 0x887   : > { %2173 = vtanh.f32 %v921_v17 }
 0x894   : > { %v2174_v62 = vpop.eup %2173 }
 0x895   : > { %924 = vrot.lane.b32.xlu1 %v2174_v62, %s2243_s15 }
 0x907   : > { %v925_v18 = vpop.permute.xlu1 %924 }
 0x908   : > { %v927_v19 = vmul.f32 %v2172_v11, %v925_v18 }
 0x90a   : > { %929 = vrot.lane.b32.xlu0 %v927_v19, %s2244_s16 }
 0x97c   : > { %v930_v20 = vpop.permute.xlu0 %929 }
 0x97d   : > { %933 = vst.msk [vmem:[#allocation3 + $0x10] sm:$0xff] %vm610_vm3, %v930_v20  ;;  %935 = vst.msk [vmem:[#allocation4 + $0x28] sm:$0xff] %vm610_vm3, %v930_v20  ;;  %2049 = vmatmul.mubr.msk.f32.vlgmr.msra.gmra.mxu1 %vm610_vm3, %v930_v20 }
 0x97e   : > { %2063 = vmatpush3.msra.mxu1 %v2385_v25  ;;  %2070 = vmatprep.mubr.msk.f32.mxu1 %vm2242_vm1, %v2241_v58 }
 0x97f   : > { %2064 = vmatprep.subr.mxu1 %v2241_v58 }
 0x980   : > { %2065 = vmatpush3.msra.mxu1 %v2394_v30 }
 0x981   : > { %2066 = vmatprep.subr.mxu1 %v2241_v58 }
 0x982   : > { %2067 = vmatpush3.msra.mxu1 %v2404_v33 }
 0x983   : > { %2068 = vmatprep.subr.mxu1 %v2241_v58 }
 0x984   : > { %2069 = vmatpush3.msra.mxu1 %v2413_v34 }
 0x985   : > { %2084 = vmatprep.subr.mxu1 %v2241_v58 }
 0xa3d   : > { %v1009_v21 = vpop.f32.mrf.mxu1 }
 0xa3e   : > { %v1013_v22 = vadd.f32 %v1009_v21, %v940_v55 }
 0xa3f   : > { %v2050_v23 = vpop.f32.mrf.mxu1 }
 0xa40   : > { %2175 = vtanh.f32 %v1013_v22  ;;  %v1907_v26 = vmul.f32 -1.442695, %v1013_v22 }
 0xa42   : > { %2177 = vpow2.f32 %v1907_v26 }
 0xa4d   : > { %v2176_v24 = vpop.eup %2175 }
 0xa4e   : > { %1023 = vrot.lane.b32.xlu1 %v2176_v24, %s2243_s15 }
 0xa4f   : > { %v2178_v27 = vpop.eup %2177 }
 0xa50   : > { %v1017_v28 = vadd.f32 1.0, %v2178_v27 }
 0xa52   : > { %2179 = vrcp.f32 %v1017_v28 }
 0xa5f   : > { %v2180_v29 = vpop.eup %2179 }
 0xa60   : > { %v1021_v37 = vmul.f32 %v2180_v29, %v921_v17 }
 0xac0   : > { %v1024_v31 = vpop.permute.xlu1 %1023 }
 0xac1   : > { %v1026_v32 = vmul.f32 %v2180_v29, %v1024_v31 }
 0xac3   : > { %1028 = vrot.lane.b32.xlu0 %v1026_v32, %s2244_s16 }
 0xb35   : > { %v1029_v38 = vpop.permute.xlu0 %1028 }
 0xb36   : > { %v1031_v39 = vadd.f32 %v1029_v38, %v1021_v37 }
 0xb38   : > { %2181 = vtanh.f32 %v1031_v39 }
 0xb45   : > { %v2182_v55 = vpop.eup %2181 }
 0xb46   : > { %1034 = vrot.lane.b32.xlu1 %v2182_v55, %s2243_s15 }
 0xbb8   : > { %v1035_v40 = vpop.permute.xlu1 %1034 }
 0xbb9   : > { %v1037_v43 = vmul.f32 %v2180_v29, %v1035_v40 }
 0xbbb   : > { %1039 = vrot.lane.b32.xlu0 %v1037_v43, %s2244_s16 }
 0xc2d   : > { %v1040_v44 = vpop.permute.xlu0 %1039 }
 0xc2e   : > { %1043 = vst.msk [vmem:[#allocation3 + $0x18] sm:$0xff] %vm610_vm3, %v1040_v44  ;;  %1045 = vst.msk [vmem:[#allocation4 + $0x20] sm:$0xff] %vm610_vm3, %v1040_v44  ;;  %2060 = vmatmul.mubr.msk.f32.vlgmr.msra.gmra.mxu0 %vm610_vm3, %v1040_v44 }
 0xc2f   : > { %2074 = vmatpush3.msra.mxu0 %v2385_v25  ;;  %2081 = vmatprep.mubr.msk.f32.mxu0 %vm2242_vm1, %v2241_v58 }
 0xc30   : > { %2075 = vmatprep.subr.mxu0 %v2241_v58 }
 0xc31   : > { %2076 = vmatpush3.msra.mxu0 %v2394_v30 }
 0xc32   : > { %2077 = vmatprep.subr.mxu0 %v2241_v58 }
 0xc33   : > { %2078 = vmatpush3.msra.mxu0 %v2404_v33 }
 0xc34   : > { %2079 = vmatprep.subr.mxu0 %v2241_v58 }
 0xc35   : > { %2080 = vmatpush3.msra.mxu0 %v2413_v34 }
 0xc36   : > { %2095 = vmatprep.subr.mxu0 %v1505_v51 }
 0xcee   : > { %v1117_v46 = vpop.f32.mrf.mxu0 }
 0xcef   : > { %v1121_v49 = vadd.f32 %v1117_v46, %v1048_v56 }
 0xcf0   : > { %v2061_v52 = vpop.f32.mrf.mxu0 }
 0xcf1   : > { %2183 = vtanh.f32 %v1121_v49  ;;  %v1909_v59 = vmul.f32 -1.442695, %v1121_v49 }
 0xcf3   : > { %2185 = vpow2.f32 %v1909_v59 }
 0xcfe   : > { %v2184_v54 = vpop.eup %2183 }
 0xcff   : > { %1131 = vrot.lane.b32.xlu1 %v2184_v54, %s2243_s15 }
 0xd00   : > { %v2186_v61 = vpop.eup %2185 }
 0xd01   : > { %v1125_v4 = vadd.f32 1.0, %v2186_v61 }
 0xd03   : > { %2187 = vrcp.f32 %v1125_v4 }
 0xd10   : > { %v2188_v5 = vpop.eup %2187 }
 0xd11   : > { %v1129_v9 = vmul.f32 %v2188_v5, %v1031_v39 }
 0xd71   : > { %v1132_v7 = vpop.permute.xlu1 %1131 }
 0xd72   : > { %v1134_v8 = vmul.f32 %v2188_v5, %v1132_v7 }
 0xd74   : > { %1136 = vrot.lane.b32.xlu0 %v1134_v8, %s2244_s16 }
 0xde6   : > { %v1137_v11 = vpop.permute.xlu0 %1136 }
 0xde7   : > { %v1139_v12 = vadd.f32 %v1137_v11, %v1129_v9  ;;  %v1503_v11 = vld [vmem:[%s2710_s6 + $0x8] sm:$0xff] }
 0xde9   : > { %2189 = vtanh.f32 %v1139_v12 }
 0xdf6   : > { %v2190_v45 = vpop.eup %2189 }
 0xdf7   : > { %1142 = vrot.lane.b32.xlu1 %v2190_v45, %s2243_s15 }
 0xe69   : > { %v1143_v48 = vpop.permute.xlu1 %1142 }
 0xe6a   : > { %v1145_v56 = vmul.f32 %v2188_v5, %v1143_v48 }
 0xe6c   : > { %1147 = vrot.lane.b32.xlu0 %v1145_v56, %s2244_s16 }
 0xede   : > { %v1148_v13 = vpop.permute.xlu0 %1147 }
 0xedf   : > { %1151 = vst.msk [vmem:[#allocation3 + $0x20] sm:$0xff] %vm610_vm3, %v1148_v13  ;;  %1153 = vst.msk [vmem:[#allocation4 + $0x18] sm:$0xff] %vm610_vm3, %v1148_v13  ;;  %2071 = vmatmul.mubr.msk.f32.vlgmr.msra.gmra.mxu1 %vm610_vm3, %v1148_v13 }
 0xee0   : > { %2085 = vmatpush3.msra.mxu1 %v2385_v25  ;;  %2092 = vmatprep.mubr.msk.f32.mxu1 %vm2242_vm1, %v2241_v58 }
 0xee1   : > { %2086 = vmatprep.subr.mxu1 %v2241_v58 }
 0xee2   : > { %2087 = vmatpush3.msra.mxu1 %v2394_v30 }
 0xee3   : > { %2088 = vmatprep.subr.mxu1 %v2241_v58 }
 0xee4   : > { %2089 = vmatpush3.msra.mxu1 %v2404_v33 }
 0xee5   : > { %2090 = vmatprep.subr.mxu1 %v2241_v58 }
 0xee6   : > { %2091 = vmatpush3.msra.mxu1 %v2413_v34 }
 0xf9f   : > { %v1225_v14 = vpop.f32.mrf.mxu1 }
 0xfa0   : > { %v1229_v25 = vadd.f32 %v1225_v14, %v1156_v63  ;;  %v1478_v14 = vld [vmem:[#allocation3] sm:$0xff] }
 0xfa1   : > { %v2072_v15 = vpop.f32.mrf.mxu1 }
 0xfa2   : > { %2191 = vtanh.f32 %v1229_v25  ;;  %v1911_v30 = vmul.f32 -1.442695, %v1229_v25 }
 0xfa4   : > { %2193 = vpow2.f32 %v1911_v30  ;;  %v1479_v30 = vld [vmem:[#allocation3 + $0x8] sm:$0xff] }
 0xfaf   : > { %v2192_v17 = vpop.eup %2191 }
 0xfb0   : > { %1239 = vrot.lane.b32.xlu1 %v2192_v17, %s2243_s15 }
 0xfb1   : > { %v2194_v62 = vpop.eup %2193 }
 0xfb2   : > { %v1233_v33 = vadd.f32 1.0, %v2194_v62 }
 0xfb4   : > { %2195 = vrcp.f32 %v1233_v33  ;;  %v1480_v33 = vld [vmem:[#allocation3 + $0x10] sm:$0xff] }
 0xfc1   : > { %v2196_v58 = vpop.eup %2195 }
 0xfc2   : > { %v1237_v19 = vmul.f32 %v2196_v58, %v1139_v12  ;;  %v1502_v12 = vld [vmem:[%s2710_s6] sm:$0xff] }
0x1022   : > { %v1240_v18 = vpop.permute.xlu1 %1239 }
0x1023   : > { %v1242_v34 = vmul.f32 %v2196_v58, %v1240_v18  ;;  %v1489_v18 = vld [vmem:[#allocation4 + $0x18] sm:$0xff] }
0x1025   : > { %1244 = vrot.lane.b32.xlu0 %v1242_v34, %s2244_s16  ;;  %v1482_v34 = vld [vmem:[#allocation3 + $0x20] sm:$0xff] }
0x1097   : > { %v1245_v20 = vpop.permute.xlu0 %1244 }
0x1098   : > { %v1247_v21 = vadd.f32 %v1245_v20, %v1237_v19  ;;  %v1481_v19 = vld [vmem:[#allocation3 + $0x18] sm:$0xff] }
0x1099   : > { %v1497_v20 = vsel %vm1477_vm4, %v1481_v19, %v1489_v18 }
0x109a   : > { %2197 = vtanh.f32 %v1247_v21 }
0x10a7   : > { %v2198_v42 = vpop.eup %2197 }
0x10a8   : > { %1250 = vrot.lane.b32.xlu1 %v2198_v42, %s2243_s15 }
0x111a   : > { %v1251_v53 = vpop.permute.xlu1 %1250 }
0x111b   : > { %v1253_v63 = vmul.f32 %v2196_v58, %v1251_v53 }
0x111d   : > { %1255 = vrot.lane.b32.xlu0 %v1253_v63, %s2244_s16 }
0x118f   : > { %v1256_v22 = vpop.permute.xlu0 %1255 }
0x1190   : > { %1259 = vst.msk [vmem:[#allocation3 + $0x28] sm:$0xff] %vm610_vm3, %v1256_v22  ;;  %1261 = vst.msk [vmem:[#allocation4 + $0x10] sm:$0xff] %vm610_vm3, %v1256_v22  ;;  %2082 = vmatmul.mubr.msk.f32.vlgmr.msra.gmra.mxu0 %vm610_vm3, %v1256_v22  ;;  %v1491_v22 = vld [vmem:[#allocation4 + $0x28] sm:$0xff] }
0x1191   : > { %2096 = vmatpush3.msra.mxu0 %v1505_v51 }
0x1197   : > { %v1488_v15 = vld [vmem:[#allocation4 + $0x10] sm:$0xff]  ;;  %v1483_v53 = vld [vmem:[#allocation3 + $0x28] sm:$0xff] }
0x1198   : > { %v1496_v58 = vsel %vm1477_vm4, %v1480_v33, %v1488_v15 }
0x1250   : > { %v1333_v23 = vpop.f32.mrf.mxu0 }
0x1251   : > { %v1337_v24 = vadd.f32 %v1333_v23, %v1264_v6  ;;  %v1499_v23 = vsel %vm1477_vm4, %v1483_v53, %v1491_v22 }
0x1252   : > { %v2083_v26 = vpop.f32.mrf.mxu0 }
0x1253   : > { %2199 = vtanh.f32 %v1337_v24  ;;  %v1913_v28 = vmul.f32 -1.442695, %v1337_v24  ;;  %v1492_v24 = vld [vmem:[#allocation4 + $0x30] sm:$0xff] }
0x1255   : > { %2201 = vpow2.f32 %v1913_v28  ;;  %v1493_v28 = vld [vmem:[#allocation4 + $0x38] sm:$0xff] }
0x1260   : > { %v2200_v27 = vpop.eup %2199 }
0x1261   : > { %1347 = vrot.lane.b32.xlu1 %v2200_v27, %s2243_s15 }
0x1262   : > { %v2202_v29 = vpop.eup %2201 }
0x1263   : > { %v1341_v31 = vadd.f32 1.0, %v2202_v29 }
0x1265   : > { %2203 = vrcp.f32 %v1341_v31 }
0x1272   : > { %v2204_v32 = vpop.eup %2203 }
0x1273   : > { %v1345_v39 = vmul.f32 %v2204_v32, %v1247_v21  ;;  %v1490_v21 = vld [vmem:[#allocation4 + $0x20] sm:$0xff] }
0x1274   : > { %v1498_v42 = vsel %vm1477_vm4, %v1482_v34, %v1490_v21 }
0x12d3   : > { %v1348_v37 = vpop.permute.xlu1 %1347 }
0x12d4   : > { %v1350_v38 = vmul.f32 %v2204_v32, %v1348_v37 }
0x12d6   : > { %1352 = vrot.lane.b32.xlu0 %v1350_v38, %s2244_s16  ;;  %v1916_v38 = vld [vmem:[%s2711_s7] ss:$0 sm:$0xff] }
0x1348   : > { %v1353_v55 = vpop.permute.xlu0 %1352 }
0x1349   : > { %v1355_v40 = vadd.f32 %v1353_v55, %v1345_v39  ;;  %v2245_v55 = vmov 1983009808  }
0x134b   : > { %2205 = vtanh.f32 %v1355_v40 }
0x1358   : > { %v2206_v41 = vpop.eup %2205 }
0x1359   : > { %1358 = vrot.lane.b32.xlu1 %v2206_v41, %s2243_s15 }
0x13cb   : > { %v1359_v57 = vpop.permute.xlu1 %1358 }
0x13cc   : > { %v1361_v6 = vmul.f32 %v2204_v32, %v1359_v57 }
0x13ce   : > { %1363 = vrot.lane.b32.xlu0 %v1361_v6, %s2244_s16 }
0x1440   : > { %v1364_v43 = vpop.permute.xlu0 %1363 }
0x1441   : > { %1367 = vst.msk [vmem:[#allocation3 + $0x30] sm:$0xff] %vm610_vm3, %v1364_v43  ;;  %1369 = vst.msk [vmem:[#allocation4 + $0x8] sm:$0xff] %vm610_vm3, %v1364_v43  ;;  %2093 = vmatmul.mubr.msk.f32.vlgmr.msra.gmra.mxu1 %vm610_vm3, %v1364_v43 }
0x1448   : > { %v1487_v13 = vld [vmem:[#allocation4 + $0x8] sm:$0xff]  ;;  %v1484_v63 = vld [vmem:[#allocation3 + $0x30] sm:$0xff] }
0x1449   : > { %v1495_v62 = vsel %vm1477_vm4, %v1479_v30, %v1487_v13  ;;  %v1500_v26 = vsel %vm1477_vm4, %v1484_v63, %v1492_v24 }
0x1501   : > { %v1441_v44 = vpop.f32.mrf.mxu1 }
0x1502   : > { %v1445_v46 = vadd.f32 %v1441_v44, %v1372_v60  ;;  %v1504_v60 = vld [vmem:[%s2710_s6 + $0x10] sm:$0xff] }
0x1503   : > { %v2094_v49 = vpop.f32.mrf.mxu1  ;;  %2097 = vmatprep.subr.mxu0 %v1504_v60 }
0x1504   : > { %2207 = vtanh.f32 %v1445_v46  ;;  %v1915_v54 = vmul.f32 -1.442695, %v1445_v46  ;;  %2098 = vmatpush3.msra.mxu0 %v1504_v60 }
0x1505   : > { %2099 = vmatprep.subr.mxu0 %v1503_v11 }
0x1506   : > { %2209 = vpow2.f32 %v1915_v54  ;;  %2100 = vmatpush3.msra.mxu0 %v1503_v11 }
0x1507   : > { %2101 = vmatprep.subr.mxu0 %v1502_v12 }
0x1508   : > { %2102 = vmatpush3.msra.mxu0 %v1502_v12 }
0x1511   : > { %v2208_v52 = vpop.eup %2207 }
0x1512   : > { %1455 = vrot.lane.b32.xlu1 %v2208_v52, %s2243_s15  ;;  %v1656_v52 = vshrl.u32 %v591_v35, 7 }
0x1513   : > { %v2210_v59 = vpop.eup %2209 }
0x1514   : > { %v1449_v61 = vadd.f32 1.0, %v2210_v59 }
0x1516   : > { %2211 = vrcp.f32 %v1449_v61 }
0x1523   : > { %v2212_v4 = vpop.eup %2211 }
0x1524   : > { %v1453_v47 = vmul.f32 %v2212_v4, %v1355_v40  ;;  %v1653_v40 = vunpack.c.l.s4 %v2245_v55 }
0x1526   : > { %v1654_v49 = vunpack.c.0.s8 %v1653_v40 }
0x1528   : > { %v1657_v51 = vsub.s32 %v1654_v49, %v1656_v52 }
0x1584   : > { %v1456_v5 = vpop.permute.xlu1 %1455 }
0x1585   : > { %v1458_v7 = vmul.f32 %v2212_v4, %v1456_v5  ;;  %v2246_v5 = vmov 1934713408  }
0x1587   : > { %1460 = vrot.lane.b32.xlu0 %v1458_v7, %s2244_s16  ;;  %v1717_v7 = vunpack.c.l.s4 %v2246_v5 }
0x1589   : > { %v1718_v12 = vunpack.c.0.s8 %v1717_v7 }
0x15f9   : > { %v1461_v8 = vpop.permute.xlu0 %1460 }
0x15fa   : > { %v1463_v9 = vadd.f32 %v1461_v8, %v1453_v47 }
0x15fc   : > { %2213 = vtanh.f32 %v1463_v9 }
0x1609   : > { %v2214_v50 = vpop.eup %2213 }
0x160a   : > { %1466 = vrot.lane.b32.xlu1 %v2214_v50, %s2243_s15 }
0x167c   : > { %v1467_v45 = vpop.permute.xlu1 %1466 }
0x167d   : > { %v1469_v48 = vmul.f32 %v2212_v4, %v1467_v45 }
0x167f   : > { %1471 = vrot.lane.b32.xlu0 %v1469_v48, %s2244_s16 }
0x16f1   : > { %v1472_v56 = vpop.permute.xlu0 %1471 }
0x16f2   : > { %1475 = vst.msk [vmem:[#allocation3 + $0x38] sm:$0xff] %vm610_vm3, %v1472_v56  ;;  %1476 = vst.msk [vmem:[#allocation4] sm:$0xff] %vm610_vm3, %v1472_v56  ;;  %v2215_v56 = vld [vmem:[%s2318_s12 + $0x20] sm:$0xff] }
0x16f9   : > { %v1486_v25 = vld [vmem:[#allocation4] sm:$0xff]  ;;  %v1485_v27 = vld [vmem:[#allocation3 + $0x38] sm:$0xff] }
0x16fa   : > { %v1494_v17 = vsel %vm1477_vm4, %v1478_v14, %v1486_v25  ;;  %v1501_v29 = vsel %vm1477_vm4, %v1485_v27, %v1493_v28  ;;  %v2216_v25 = vld [vmem:[%s2318_s12 + $0x30] sm:$0xff] }
0x16fb   : > { %2103 = vmatprep.mubr.msk.f32.mxu0 %vm610_vm3, %v1494_v17 }
0x16fc   : > { %2104 = vmatmul.mubr.msk.f32.vlgmr.msra.gmra.mxu0 %vm610_vm3, %v1495_v62 }
0x16fd   : > { %2106 = vmatprep.mubr.msk.f32.mxu0 %vm610_vm3, %v1496_v58  ;;  %v1721_v58 = vsub.s32 %v1718_v12, %v1656_v52 }
0x1700   : > { %2107 = vmatmul.mubr.msk.f32.gmra.mxu0 %vm610_vm3, %v1497_v20 }
0x1701   : > { %2109 = vmatprep.mubr.msk.f32.mxu0 %vm610_vm3, %v1498_v42 }
0x1704   : > { %2110 = vmatmul.mubr.msk.f32.gmra.mxu0 %vm610_vm3, %v1499_v23 }
0x1705   : > { %2112 = vmatprep.mubr.msk.f32.mxu0 %vm610_vm3, %v1500_v26 }
0x1708   : > { %2113 = vmatmul.mubr.msk.f32.gmra.mxu0 %vm610_vm3, %v1501_v29 }
0x17bc   : > { %v2105_v31 = vpop.f32.mrf.mxu0 }
0x17bd   : > { %v1609_v44 = vadd.f32 %v2105_v31, %v1916_v38 }
0x17be   : > { %v1603_v32 = vpop.f32.mrf.mxu0 }
0x17bf   : > { %v1604_v41 = vadd.f32 %v1916_v38, %v1603_v32  ;;  %v1643_v47 = vadd.f32 %v1609_v44, %v2324_v1 }
0x17c0   : > { %v2108_v37 = vpop.f32.mrf.mxu0 }
0x17c1   : > { %v1619_v57 = vadd.f32 %v2108_v37, %v1916_v38  ;;  %v1642_v54 = vadd.f32 %v1604_v41, %v2321_v0 }
0x17c2   : > { %v1613_v39 = vpop.f32.mrf.mxu0 }
0x17c3   : > { %v1614_v6 = vadd.f32 %v1916_v38, %v1613_v39  ;;  %v1645_v59 = vadd.f32 %v1619_v57, %v2330_v3 }
0x17c4   : > { %v2111_v43 = vpop.f32.mrf.mxu0 }
0x17c5   : > { %v1644_v36 = vadd.f32 %v1614_v6, %v2327_v2  ;;  %v1629_v61 = vadd.f32 %v2111_v43, %v1916_v38  ;;  %v1666_v60 = vcombine.low %v1643_v47, %v1645_v59  ;;  %v1667_v45 = vcombine.high %v1643_v47, %v1645_v59 }
0x17c6   : > { %v1623_v46 = vpop.f32.mrf.mxu0 }
0x17c7   : > { %v1650_v8 = vcombine.low %v1642_v54, %v1644_v36  ;;  %v1624_v50 = vadd.f32 %v1916_v38, %v1623_v46  ;;  %v1651_v11 = vcombine.high %v1642_v54, %v1644_v36  ;;  %v1647_v35 = vadd.f32 %v1629_v61, %v2342_v10 }
0x17c8   : > { %v2114_v4 = vpop.f32.mrf.mxu0  ;;  %v1674_v17 = vrot.slane %v1666_v60, %v1657_v51  ;;  %v1681_v18 = vrot.slane %v1667_v45, %v1657_v51 }
0x17c9   : > { %v1639_v9 = vadd.f32 %v2114_v4, %v1916_v38  ;;  %v1658_v48 = vrot.slane %v1650_v8, %v1657_v51  ;;  %v1646_v13 = vadd.f32 %v2215_v56, %v1624_v50  ;;  %v1665_v30 = vrot.slane %v1651_v11, %v1657_v51 }
0x17ca   : > { %v1633_v2 = vpop.f32.mrf.mxu0 }
0x17cb   : > { %v1649_v0 = vadd.f32 %v1639_v9, %v2349_v16  ;;  %v1634_v3 = vadd.f32 %v1916_v38, %v1633_v2  ;;  %v1714_v34 = vcombine.low %v1658_v48, %v1674_v17  ;;  %v1715_v10 = vcombine.high %v1658_v48, %v1674_v17 }
0x17cc   : > { %v1730_v42 = vcombine.low %v1665_v30, %v1681_v18  ;;  %v1731_v53 = vcombine.high %v1665_v30, %v1681_v18 }
0x17cd   : > { %v1698_v14 = vcombine.low %v1647_v35, %v1649_v0  ;;  %v1699_v1 = vcombine.high %v1647_v35, %v1649_v0  ;;  %v1648_v15 = vadd.f32 %v2216_v25, %v1634_v3  ;;  %v1722_v26 = vrot.slane %v1714_v34, %v1721_v58 }
0x17ce   : > { %v1729_v27 = vrot.slane %v1715_v10, %v1721_v58  ;;  %v1738_v37 = vrot.slane %v1730_v42, %v1721_v58  ;;  %v1745_v38 = vrot.slane %v1731_v53, %v1721_v58 }
0x17cf   : > { %v1682_v62 = vcombine.low %v1646_v13, %v1648_v15  ;;  %v1683_v33 = vcombine.high %v1646_v13, %v1648_v15  ;;  %v1706_v19 = vrot.slane %v1698_v14, %v1657_v51  ;;  %v1713_v16 = vrot.slane %v1699_v1, %v1657_v51 }
0x17d1   : > { %v1690_v20 = vrot.slane %v1682_v62, %v1657_v51  ;;  %v1697_v21 = vrot.slane %v1683_v33, %v1657_v51 }
0x17d3   : > { %v1746_v63 = vcombine.low %v1690_v20, %v1706_v19  ;;  %v1747_v22 = vcombine.high %v1690_v20, %v1706_v19  ;;  %v1762_v23 = vcombine.low %v1697_v21, %v1713_v16  ;;  %v1763_v24 = vcombine.high %v1697_v21, %v1713_v16 }
0x17d5   : > { %v1754_v28 = vrot.slane %v1746_v63, %v1721_v58  ;;  %v1761_v29 = vrot.slane %v1747_v22, %v1721_v58  ;;  %v1770_v31 = vrot.slane %v1762_v23, %v1721_v58  ;;  %v1777_v32 = vrot.slane %v1763_v24, %v1721_v58 }
0x17d7   : > { %v1778_v39 = vcombine.low %v1722_v26, %v1754_v28  ;;  %v1779_v55 = vcombine.high %v1722_v26, %v1754_v28  ;;  %v1780_v40 = vcombine.low %v1729_v27, %v1761_v29  ;;  %v1781_v41 = vcombine.high %v1729_v27, %v1761_v29 }
0x17d8   : > { %v1782_v57 = vcombine.low %v1738_v37, %v1770_v31  ;;  %v1783_v6 = vcombine.high %v1738_v37, %v1770_v31  ;;  %v1784_v43 = vcombine.low %v1745_v38, %v1777_v32  ;;  %v1785_v44 = vcombine.high %v1745_v38, %v1777_v32 }
0x17d9   : > { %1786 = vst.msk [vmem:[%s338_s11] sm:$0xff] %vm348_vm0, %v1778_v39  ;;  %1787 = vst.msk [vmem:[%s338_s11 + $0x8] sm:$0xff] %vm348_vm0, %v1779_v55 }
0x17da   : > { %1788 = vst.msk [vmem:[%s338_s11 + $0x10] sm:$0xff] %vm348_vm0, %v1780_v40  ;;  %1789 = vst.msk [vmem:[%s338_s11 + $0x18] sm:$0xff] %vm348_vm0, %v1781_v41 }
0x17db   : > { %1790 = vst.msk [vmem:[%s338_s11 + $0x20] sm:$0xff] %vm348_vm0, %v1782_v57  ;;  %1791 = vst.msk [vmem:[%s338_s11 + $0x28] sm:$0xff] %vm348_vm0, %v1783_v6 }
0x17dc   : > { %1792 = vst.msk [vmem:[%s338_s11 + $0x30] sm:$0xff] %vm348_vm0, %v1784_v43  ;;  %1793 = vst.msk [vmem:[%s338_s11 + $0x38] sm:$0xff] %vm348_vm0, %v1785_v44 }
0x17dd PF: > { %s18_s29 = sadd.s32 1, %s2239_s29   ;;  %s2715_s27 = smov %s2235_s28 }
0x17de   : > { %p15_p5 = scmp.ge.s32.totalorder %s18_s29, 6   ;;  %s2716_s28 = smov %s2718_s30 }
0x17e0   :  { %17 = sbr.rel (!%p15_p5) target bundleno = 2 (0x2), region = 103 }

</bundles_post_ra>
